<compile_context>
chip_gen: v6e
topology: v6e:2x2x1
jax: 0.10.0
libtpu: 0.0.40
codegen_flags: <defaults>
</compile_context>

<pallas_src>
import jax
import jax.numpy as jnp
from jax.experimental import pallas as pl
from jax.experimental.pallas import tpu as pltpu
import functools

EPS = 1e-5


# ---------------------------------------------------------------------------
# Pallas kernel: fused (reparameterized) 3x3 conv(s) + bias + ReLU, one sample
# ---------------------------------------------------------------------------
def _make_conv3x3_kernel(cins, img_w, hw, pad):
    """Build a kernel computing relu(sum_j conv3x3(x_j, w_j) + b).

    refs = (*x_refs, w_ref, b_ref, o_ref, xcol_ref)
      x_refs[j]: (1, cins[j], L) bf16   flat-padded activation (L = HW + 2*pad)
      w_ref:     (Cout, K)      bf16    K = 9 * sum(cins), packed (kh, kw, cin)
      b_ref:     (Cout, 1)      f32
      o_ref:     (1, Cout, HW)  bf16    lane-dense, NCHW-flat
      xcol_ref:  (K, HW)        bf16    VMEM scratch holding the stacked taps
    """
    n_in = len(cins)

    def kernel(*refs):
        x_refs = refs[:n_in]
        w_ref, b_ref, o_ref, xcol_ref = refs[n_in:]
        dt = xcol_ref.dtype

        # Column-validity masks (the flat-shift trick wraps across row ends).
        col = jax.lax.broadcasted_iota(jnp.int32, (1, hw), 1) % img_w
        mask_l = jnp.where(col > 0, 1.0, 0.0).astype(dt)           # dx = -1
        mask_r = jnp.where(col < img_w - 1, 1.0, 0.0).astype(dt)   # dx = +1

        # Build the (K, HW) stacked-tap matrix in VMEM: each 3x3 tap is a
        # static lane-slice of the flat-padded input (rows out of range read
        # the zero padding; wrapped columns are masked above).
        row = 0
        for x_ref, cin in zip(x_refs, cins):
            for dy in (-1, 0, 1):
                for dx in (-1, 0, 1):
                    off = pad + dy * img_w + dx          # static, >= 0
                    t = x_ref[0, :, off:off + hw]        # (cin, HW)
                    if dx == -1:
                        t = t * mask_l
                    elif dx == 1:
                        t = t * mask_r
                    xcol_ref[row:row + cin, :] = t
                    row += cin

        # Single MXU contraction over K = 9*sum(cins); f32 accumulation.
        acc = jnp.dot(w_ref[...], xcol_ref[...],
                      preferred_element_type=jnp.float32)           # (Cout, HW)
        acc = acc + b_ref[...]                                      # bias (f32)
        o_ref[0] = jnp.maximum(acc, 0.0).astype(o_ref.dtype)

    return kernel


def fused_conv3x3_relu(xs, w, b, *, img_h, img_w):
    """relu(sum_j conv3x3(xs[j]) + b); xs[j]: (N, Cj, L) bf16 flat-padded."""
    n = int(xs[0].shape[0])
    cins = tuple(int(x.shape[1]) for x in xs)
    L = int(xs[0].shape[2])
    hw = img_h * img_w
    pad = (L - hw) // 2
    cout, K = int(w.shape[0]), int(w.shape[1])
    assert K == 9 * sum(cins) and pad >= img_w + 1

    in_specs = [pl.BlockSpec((1, c, L), lambda i: (i, 0, 0)) for c in cins]
    in_specs += [pl.BlockSpec((cout, K), lambda i: (0, 0)),
                 pl.BlockSpec((cout, 1), lambda i: (0, 0))]

    bytes_accessed = (sum(x.size * x.dtype.itemsize for x in xs)
                      + w.size * w.dtype.itemsize + b.size * 4
                      + n * cout * hw * 2)

    return pl.pallas_call(
        _make_conv3x3_kernel(cins, img_w, hw, pad),
        out_shape=jax.ShapeDtypeStruct((n, cout, hw), jnp.bfloat16),
        grid=(n,),
        in_specs=in_specs,
        out_specs=pl.BlockSpec((1, cout, hw), lambda i: (i, 0, 0)),
        scratch_shapes=[pltpu.VMEM((K, hw), jnp.bfloat16)],
        compiler_params=pltpu.CompilerParams(
            dimension_semantics=("parallel",),      # N shards across TCs (v7x)
            vmem_limit_bytes=48 * 1024 * 1024),     # fits v5e/v6e/v7x budgets
        cost_estimate=pl.CostEstimate(
            flops=2 * n * hw * K * cout, transcendentals=0,
            bytes_accessed=int(bytes_accessed)),
    )(*xs, w, b)


# ---------------------------------------------------------------------------
# Glue: parameter init, BN folding (RepVGG-style reparameterization)
# ---------------------------------------------------------------------------
def _bn_params(key, c):
    ks = jax.random.split(key, 4)
    gamma = 1.0 + 0.1 * jax.random.normal(ks[0], (c,), jnp.float32)
    beta = 0.1 * jax.random.normal(ks[1], (c,), jnp.float32)
    mean = 0.1 * jax.random.normal(ks[2], (c,), jnp.float32)
    var = 1.0 + 0.1 * jnp.abs(jax.random.normal(ks[3], (c,), jnp.float32))
    return gamma, beta, mean, var


def init_multipath(key, cin, cout, groups, stride):
    ks = jax.random.split(key, 5)
    p = {
        "w3": 0.1 * jax.random.normal(ks[0], (cout, cin // groups, 3, 3), jnp.float32),
        "bn3": _bn_params(ks[1], cout),
        "w1": 0.1 * jax.random.normal(ks[2], (cout, cin // groups, 1, 1), jnp.float32),
        "bn1": _bn_params(ks[3], cout),
        "has_id": (cin == cout and stride == 1),
    }
    if p["has_id"]:
        p["bnid"] = _bn_params(ks[4], cin)
    return p


def _fold_conv_bn(w, bn):
    gamma, beta, mean, var = bn
    scale = gamma / jnp.sqrt(var + EPS)
    return w * scale[:, None, None, None], beta - mean * scale


def _expand_groups(w, groups, cin):
    cout, cin_g, kh, kw = w.shape
    cout_g = cout // groups
    dense = jnp.zeros((cout, cin, kh, kw), w.dtype)
    for g in range(groups):
        dense = dense.at[g * cout_g:(g + 1) * cout_g,
                         g * cin_g:(g + 1) * cin_g].set(
            w[g * cout_g:(g + 1) * cout_g])
    return dense


def fold_multipath(p, cin, cout, groups):
    """Fold MultiPath (3x3+BN, 1x1+BN, id BN) into (Cout, 9*Cin) + (Cout, 1)."""
    w3f, b3 = _fold_conv_bn(p["w3"], p["bn3"])
    w = _expand_groups(w3f, groups, cin)                 # (Cout, Cin, 3, 3)
    w1f, b1 = _fold_conv_bn(p["w1"], p["bn1"])
    w1d = _expand_groups(w1f, groups, cin)
    w = w.at[:, :, 1, 1].add(w1d[:, :, 0, 0])
    b = b3 + b1
    if p["has_id"]:
        gamma, beta, mean, var = p["bnid"]
        scale = gamma / jnp.sqrt(var + EPS)
        w = w.at[jnp.arange(cout), jnp.arange(cout), 1, 1].add(scale)
        b = b + (beta - mean * scale)
    # Pack rows as (kh, kw, cin) to match the kernel's (dy, dx, channel) order.
    wk = jnp.transpose(w, (0, 2, 3, 1)).reshape(cout, 9 * cin)   # f32
    return wk, b.reshape(cout, 1)                                 # f32


# ---------------------------------------------------------------------------
# CycleConvBlock forward (stride == 1 branch), Pallas-backed
# ---------------------------------------------------------------------------
def cycle_conv_block_pallas(xa, xb, folded, *, img_h, img_w):
    n = xa.shape[0]
    hw = img_h * img_w
    pad = img_w + 1   # smallest padding so every tap slice start is >= 0

    def prep(x_nchw):          # NCHW f32 -> (N, C, L) bf16, flat-padded
        xf = x_nchw.reshape(x_nchw.shape[0], x_nchw.shape[1], hw)
        return jnp.pad(xf.astype(jnp.bfloat16), ((0, 0), (0, 0), (pad, pad)))

    def prep_flat(x_flat):     # (N, C, HW) bf16 -> flat-padded
        return jnp.pad(x_flat, ((0, 0), (0, 0), (pad, pad)))

    def single(x_pad, name):
        w, b = folded[name]
        return fused_conv3x3_relu([x_pad], w.astype(jnp.bfloat16), b,
                                  img_h=img_h, img_w=img_w)

    def dual(x1_pad, name1, x2_pad, name2):
        w1, b1 = folded[name1]
        w2, b2 = folded[name2]
        w = jnp.concatenate([w1, w2], axis=1).astype(jnp.bfloat16)
        return fused_conv3x3_relu([x1_pad, x2_pad], w, b1 + b2,
                                  img_h=img_h, img_w=img_w)

    xa1 = single(prep(xa), "lr_aa")                                   # (N,C,HW)
    xb1 = dual(prep(xb), "lr_bb", prep_flat(xa1), "lr_ab")
    xb2 = single(prep_flat(xb1), "rl_bb")
    xa2 = dual(prep_flat(xa1), "rl_aa", prep_flat(xb2), "rl_ba")

    cout = xa2.shape[1]
    to_nchw = lambda y: y.reshape(n, cout, img_h, img_w)   # already NCHW-flat
    return to_nchw(xa2), to_nchw(xb2)


# ---------------------------------------------------------------------------
# Pure-JAX reference (un-folded grouped convs + BN) for validation
# ---------------------------------------------------------------------------
def _conv2d_ref(x, w, stride, padding, groups):
    return jax.lax.conv_general_dilated(
        x, w, (stride, stride), [(padding, padding)] * 2,
        dimension_numbers=("NCHW", "OIHW", "NCHW"),
        feature_group_count=groups)


def _bn_ref(x, bn):
    gamma, beta, mean, var = bn
    scale = gamma / jnp.sqrt(var + EPS)
    return x * scale[None, :, None, None] + (beta - mean * scale)[None, :, None, None]


def _multipath_ref(x, p, groups):
    y = _bn_ref(_conv2d_ref(x, p["w3"], 1, 1, groups), p["bn3"])
    y = y + _bn_ref(_conv2d_ref(x, p["w1"], 1, 0, groups), p["bn1"])
    if p["has_id"]:
        y = y + _bn_ref(x, p["bnid"])
    return y


def cycle_conv_block_ref(xa, xb, params, specs):
    relu = jax.nn.relu
    g = lambda name: specs[name][2]
    xa = relu(_multipath_ref(xa, params["lr_aa"], g("lr_aa")))
    xb = relu(_multipath_ref(xb, params["lr_bb"], g("lr_bb"))
              + _multipath_ref(xa, params["lr_ab"], g("lr_ab")))
    xb = relu(_multipath_ref(xb, params["rl_bb"], g("rl_bb")))
    xa = relu(_multipath_ref(xa, params["rl_aa"], g("rl_aa"))
              + _multipath_ref(xb, params["rl_ba"], g("rl_ba")))
    return xa, xb


# ---------------------------------------------------------------------------
if __name__ == "__main__":
    key = jax.random.PRNGKey(0)
    N, inplanes, outplanes, H, W = 2, 8, 8, 16, 16
    groups, stride = 2, 1
    cin, cout = inplanes // 2, outplanes // 2

    k_xa, k_xb, k_p = jax.random.split(key, 3)
    xa = jax.random.normal(k_xa, (N, cin, H, W), jnp.float32)
    xb = jax.random.normal(k_xb, (N, cin, H, W), jnp.float32)

    names = ["lr_aa", "lr_bb", "lr_ab", "rl_bb", "rl_aa", "rl_ba"]
    specs = {
        "lr_aa": (cin, cout, groups),
        "lr_bb": (cin, cout, groups),
        "lr_ab": (cout, cout, 1),
        "rl_bb": (cin, cout, groups),
        "rl_aa": (cin, cout, groups),
        "rl_ba": (cout, cout, 1),
    }
    params, folded = {}, {}
    for name, pk in zip(names, jax.random.split(k_p, len(names))):
        ci, co, g = specs[name]
        params[name] = init_multipath(pk, ci, co, g, stride)
        folded[name] = fold_multipath(params[name], ci, co, g)

    forward = jax.jit(functools.partial(cycle_conv_block_pallas,
                                        img_h=H, img_w=W))
    ya, yb = forward(xa, xb, folded)
    jax.block_until_ready((ya, yb))

    ya_ref, yb_ref = cycle_conv_block_ref(xa, xb, params, specs)
    assert ya.shape == ya_ref.shape and yb.shape == yb_ref.shape
    # Kernels run activations/weights in bf16 (f32 accumulation), so compare
    # against the f32 un-folded reference with a correspondingly looser bound.
    assert jnp.allclose(ya.astype(jnp.float32), ya_ref, atol=5e-2, rtol=5e-2)
    assert jnp.allclose(yb.astype(jnp.float32), yb_ref, atol=5e-2, rtol=5e-2)
    print("KERNEL_OK")
</pallas_src>

<mosaic_0001>
module attributes {stable_mosaic.version = 11 : i64} {
  func.func @kernel(%arg0: i32, %arg1: memref<1x4x290xbf16, #tpu.memory_space<vmem>>, %arg2: memref<4x36xbf16, #tpu.memory_space<vmem>>, %arg3: memref<4x1xf32, #tpu.memory_space<vmem>>, %arg4: memref<1x4x256xbf16, #tpu.memory_space<vmem>>, %arg5: memref<36x256xbf16, #tpu.memory_space<vmem>>) attributes {dimension_semantics = [#tpu.dimension_semantics<parallel>], iteration_bounds = array<i64: 2>, scalar_prefetch = 0 : i64, scratch_operands = 1 : i64, tpu.core_type = #tpu.core_type<tc>, window_params = [{transform_indices = @transform_0, window_bounds = array<i64: 1, 4, 290>}, {pipeline_mode = #tpu.pipeline_mode<synchronous>, transform_indices = @transform_1, window_bounds = array<i64: 4, 36>}, {pipeline_mode = #tpu.pipeline_mode<synchronous>, transform_indices = @transform_2, window_bounds = array<i64: 4, 1>}, {transform_indices = @transform_3, window_bounds = array<i64: 1, 4, 256>}]} {
    %0 = tpu.iota {dimensions = array<i32: 1>} : vector<1x256xi32>
    %c16_i32 = arith.constant 16 : i32
    %c0_i32 = arith.constant 0 : i32
    %1 = arith.cmpi eq, %c16_i32, %c0_i32 : i32
    %c1_i32 = arith.constant 1 : i32
    %2 = arith.select %1, %c1_i32, %c16_i32 : i32
    %3 = vector.broadcast %2 : i32 to vector<1x256xi32>
    %4 = arith.remsi %0, %3 : vector<1x256xi32>
    %c0_i32_0 = arith.constant 0 : i32
    %5 = vector.broadcast %c0_i32_0 : i32 to vector<1x256xi32>
    %6 = arith.cmpi ne, %4, %5 : vector<1x256xi32>
    %c0_i32_1 = arith.constant 0 : i32
    %7 = vector.broadcast %c0_i32_1 : i32 to vector<1x256xi32>
    %8 = arith.cmpi slt, %4, %7 : vector<1x256xi32>
    %c0_i32_2 = arith.constant 0 : i32
    %9 = arith.cmpi slt, %2, %c0_i32_2 : i32
    %10 = vector.broadcast %9 : i1 to vector<1x256xi1>
    %11 = vector.broadcast %10 : vector<1x256xi1> to vector<1x256xi1>
    %12 = arith.xori %8, %11 : vector<1x256xi1>
    %13 = arith.andi %12, %6 : vector<1x256xi1>
    %14 = vector.broadcast %2 : i32 to vector<1x256xi32>
    %15 = arith.addi %4, %14 : vector<1x256xi32>
    %16 = arith.select %13, %15, %4 : vector<1x256xi1>, vector<1x256xi32>
    %c0_i32_3 = arith.constant 0 : i32
    %17 = vector.broadcast %c0_i32_3 : i32 to vector<1x256xi32>
    %18 = arith.cmpi sgt, %16, %17 : vector<1x256xi32>
    %cst = arith.constant 1.000000e+00 : f32
    %cst_4 = arith.constant 0.000000e+00 : f32
    %19 = vector.broadcast %cst : f32 to vector<1x256xf32>
    %20 = vector.broadcast %cst_4 : f32 to vector<1x256xf32>
    %21 = arith.select %18, %19, %20 : vector<1x256xi1>, vector<1x256xf32>
    %22 = arith.truncf %21 : vector<1x256xf32> to vector<1x256xbf16>
    %c15_i32 = arith.constant 15 : i32
    %23 = vector.broadcast %c15_i32 : i32 to vector<1x256xi32>
    %24 = arith.cmpi slt, %16, %23 : vector<1x256xi32>
    %cst_5 = arith.constant 1.000000e+00 : f32
    %cst_6 = arith.constant 0.000000e+00 : f32
    %25 = vector.broadcast %cst_5 : f32 to vector<1x256xf32>
    %26 = vector.broadcast %cst_6 : f32 to vector<1x256xf32>
    %27 = arith.select %24, %25, %26 : vector<1x256xi1>, vector<1x256xf32>
    %28 = arith.truncf %27 : vector<1x256xf32> to vector<1x256xbf16>
    %c0 = arith.constant 0 : index
    %c0_7 = arith.constant 0 : index
    %c0_8 = arith.constant 0 : index
    %29 = vector.load %arg1[%c0, %c0_7, %c0_8] : memref<1x4x290xbf16, #tpu.memory_space<vmem>>, vector<1x4x256xbf16>
    %30 = vector.shape_cast %29 : vector<1x4x256xbf16> to vector<4x256xbf16>
    %31 = vector.broadcast %22 : vector<1x256xbf16> to vector<4x256xbf16>
    %32 = arith.mulf %30, %31 : vector<4x256xbf16>
    %c0_9 = arith.constant 0 : index
    %c0_10 = arith.constant 0 : index
    %33 = vector.load %arg5[%c0_9, %c0_10] : memref<36x256xbf16, #tpu.memory_space<vmem>>, vector<4x256xbf16>
    tpu.vector_store %arg5[%c0_9, %c0_10], %32 {strides = array<i32>} : memref<36x256xbf16, #tpu.memory_space<vmem>>, vector<4x256xbf16>,
    %c0_11 = arith.constant 0 : index
    %c0_12 = arith.constant 0 : index
    %c1 = arith.constant 1 : index
    %34 = vector.load %arg1[%c0_11, %c0_12, %c1] : memref<1x4x290xbf16, #tpu.memory_space<vmem>>, vector<1x4x256xbf16>
    %35 = vector.shape_cast %34 : vector<1x4x256xbf16> to vector<4x256xbf16>
    %c4 = arith.constant 4 : index
    %c0_13 = arith.constant 0 : index
    %36 = vector.load %arg5[%c4, %c0_13] : memref<36x256xbf16, #tpu.memory_space<vmem>>, vector<4x256xbf16>
    tpu.vector_store %arg5[%c4, %c0_13], %35 {strides = array<i32>} : memref<36x256xbf16, #tpu.memory_space<vmem>>, vector<4x256xbf16>,
    %c0_14 = arith.constant 0 : index
    %c0_15 = arith.constant 0 : index
    %c2 = arith.constant 2 : index
    %37 = vector.load %arg1[%c0_14, %c0_15, %c2] : memref<1x4x290xbf16, #tpu.memory_space<vmem>>, vector<1x4x256xbf16>
    %38 = vector.shape_cast %37 : vector<1x4x256xbf16> to vector<4x256xbf16>
    %39 = vector.broadcast %28 : vector<1x256xbf16> to vector<4x256xbf16>
    %40 = arith.mulf %38, %39 : vector<4x256xbf16>
    %c8 = arith.constant 8 : index
    %c0_16 = arith.constant 0 : index
    %41 = vector.load %arg5[%c8, %c0_16] : memref<36x256xbf16, #tpu.memory_space<vmem>>, vector<4x256xbf16>
    tpu.vector_store %arg5[%c8, %c0_16], %40 {strides = array<i32>} : memref<36x256xbf16, #tpu.memory_space<vmem>>, vector<4x256xbf16>,
    %c0_17 = arith.constant 0 : index
    %c0_18 = arith.constant 0 : index
    %c16 = arith.constant 16 : index
    %42 = vector.load %arg1[%c0_17, %c0_18, %c16] : memref<1x4x290xbf16, #tpu.memory_space<vmem>>, vector<1x4x256xbf16>
    %43 = vector.shape_cast %42 : vector<1x4x256xbf16> to vector<4x256xbf16>
    %44 = vector.broadcast %22 : vector<1x256xbf16> to vector<4x256xbf16>
    %45 = arith.mulf %43, %44 : vector<4x256xbf16>
    %c12 = arith.constant 12 : index
    %c0_19 = arith.constant 0 : index
    %46 = vector.load %arg5[%c12, %c0_19] : memref<36x256xbf16, #tpu.memory_space<vmem>>, vector<4x256xbf16>
    tpu.vector_store %arg5[%c12, %c0_19], %45 {strides = array<i32>} : memref<36x256xbf16, #tpu.memory_space<vmem>>, vector<4x256xbf16>,
    %c0_20 = arith.constant 0 : index
    %c0_21 = arith.constant 0 : index
    %c17 = arith.constant 17 : index
    %47 = vector.load %arg1[%c0_20, %c0_21, %c17] : memref<1x4x290xbf16, #tpu.memory_space<vmem>>, vector<1x4x256xbf16>
    %48 = vector.shape_cast %47 : vector<1x4x256xbf16> to vector<4x256xbf16>
    %c16_22 = arith.constant 16 : index
    %c0_23 = arith.constant 0 : index
    %49 = vector.load %arg5[%c16_22, %c0_23] : memref<36x256xbf16, #tpu.memory_space<vmem>>, vector<4x256xbf16>
    tpu.vector_store %arg5[%c16_22, %c0_23], %48 {strides = array<i32>} : memref<36x256xbf16, #tpu.memory_space<vmem>>, vector<4x256xbf16>,
    %c0_24 = arith.constant 0 : index
    %c0_25 = arith.constant 0 : index
    %c18 = arith.constant 18 : index
    %50 = vector.load %arg1[%c0_24, %c0_25, %c18] : memref<1x4x290xbf16, #tpu.memory_space<vmem>>, vector<1x4x256xbf16>
    %51 = vector.shape_cast %50 : vector<1x4x256xbf16> to vector<4x256xbf16>
    %52 = vector.broadcast %28 : vector<1x256xbf16> to vector<4x256xbf16>
    %53 = arith.mulf %51, %52 : vector<4x256xbf16>
    %c20 = arith.constant 20 : index
    %c0_26 = arith.constant 0 : index
    %54 = vector.load %arg5[%c20, %c0_26] : memref<36x256xbf16, #tpu.memory_space<vmem>>, vector<4x256xbf16>
    tpu.vector_store %arg5[%c20, %c0_26], %53 {strides = array<i32>} : memref<36x256xbf16, #tpu.memory_space<vmem>>, vector<4x256xbf16>,
    %c0_27 = arith.constant 0 : index
    %c0_28 = arith.constant 0 : index
    %c32 = arith.constant 32 : index
    %55 = vector.load %arg1[%c0_27, %c0_28, %c32] : memref<1x4x290xbf16, #tpu.memory_space<vmem>>, vector<1x4x256xbf16>
    %56 = vector.shape_cast %55 : vector<1x4x256xbf16> to vector<4x256xbf16>
    %57 = vector.broadcast %22 : vector<1x256xbf16> to vector<4x256xbf16>
    %58 = arith.mulf %56, %57 : vector<4x256xbf16>
    %c24 = arith.constant 24 : index
    %c0_29 = arith.constant 0 : index
    %59 = vector.load %arg5[%c24, %c0_29] : memref<36x256xbf16, #tpu.memory_space<vmem>>, vector<4x256xbf16>
    tpu.vector_store %arg5[%c24, %c0_29], %58 {strides = array<i32>} : memref<36x256xbf16, #tpu.memory_space<vmem>>, vector<4x256xbf16>,
    %c0_30 = arith.constant 0 : index
    %c0_31 = arith.constant 0 : index
    %c33 = arith.constant 33 : index
    %60 = vector.load %arg1[%c0_30, %c0_31, %c33] : memref<1x4x290xbf16, #tpu.memory_space<vmem>>, vector<1x4x256xbf16>
    %61 = vector.shape_cast %60 : vector<1x4x256xbf16> to vector<4x256xbf16>
    %c28 = arith.constant 28 : index
    %c0_32 = arith.constant 0 : index
    %62 = vector.load %arg5[%c28, %c0_32] : memref<36x256xbf16, #tpu.memory_space<vmem>>, vector<4x256xbf16>
    tpu.vector_store %arg5[%c28, %c0_32], %61 {strides = array<i32>} : memref<36x256xbf16, #tpu.memory_space<vmem>>, vector<4x256xbf16>,
    %c0_33 = arith.constant 0 : index
    %c0_34 = arith.constant 0 : index
    %c34 = arith.constant 34 : index
    %63 = vector.load %arg1[%c0_33, %c0_34, %c34] : memref<1x4x290xbf16, #tpu.memory_space<vmem>>, vector<1x4x256xbf16>
    %64 = vector.shape_cast %63 : vector<1x4x256xbf16> to vector<4x256xbf16>
    %65 = vector.broadcast %28 : vector<1x256xbf16> to vector<4x256xbf16>
    %66 = arith.mulf %64, %65 : vector<4x256xbf16>
    %c32_35 = arith.constant 32 : index
    %c0_36 = arith.constant 0 : index
    %67 = vector.load %arg5[%c32_35, %c0_36] : memref<36x256xbf16, #tpu.memory_space<vmem>>, vector<4x256xbf16>
    tpu.vector_store %arg5[%c32_35, %c0_36], %66 {strides = array<i32>} : memref<36x256xbf16, #tpu.memory_space<vmem>>, vector<4x256xbf16>,
    %c0_37 = arith.constant 0 : index
    %c0_38 = arith.constant 0 : index
    %68 = vector.load %arg2[%c0_37, %c0_38] : memref<4x36xbf16, #tpu.memory_space<vmem>>, vector<4x36xbf16>
    %c0_39 = arith.constant 0 : index
    %c0_40 = arith.constant 0 : index
    %69 = vector.load %arg5[%c0_39, %c0_40] : memref<36x256xbf16, #tpu.memory_space<vmem>>, vector<36x256xbf16>
    %cst_41 = arith.constant dense<0.000000e+00> : vector<4x256xf32>
    %70 = tpu.matmul %68, %69, %cst_41 {dimension_numbers = #tpu.dot_dimension_numbers<[1], [0], [0], [1], [0, 0, 1, 1], [], []>} : vector<4x36xbf16>, vector<36x256xbf16>, vector<4x256xf32> -> vector<4x256xf32>
    %c0_42 = arith.constant 0 : index
    %c0_43 = arith.constant 0 : index
    %71 = vector.load %arg3[%c0_42, %c0_43] : memref<4x1xf32, #tpu.memory_space<vmem>>, vector<4x1xf32>
    %72 = vector.broadcast %71 : vector<4x1xf32> to vector<4x256xf32>
    %73 = arith.addf %70, %72 : vector<4x256xf32>
    %cst_44 = arith.constant 0.000000e+00 : f32
    %74 = vector.broadcast %cst_44 : f32 to vector<4x256xf32>
    %75 = arith.maximumf %73, %74 : vector<4x256xf32>
    %76 = arith.truncf %75 : vector<4x256xf32> to vector<4x256xbf16>
    %c0_45 = arith.constant 0 : index
    %c0_46 = arith.constant 0 : index
    %c0_47 = arith.constant 0 : index
    %77 = vector.load %arg4[%c0_45, %c0_46, %c0_47] : memref<1x4x256xbf16, #tpu.memory_space<vmem>>, vector<1x4x256xbf16>
    %78 = vector.shape_cast %77 : vector<1x4x256xbf16> to vector<4x256xbf16>
    %79 = vector.shape_cast %76 : vector<4x256xbf16> to vector<1x4x256xbf16>
    tpu.vector_store %arg4[%c0_45, %c0_46, %c0_47], %79 {strides = array<i32>} : memref<1x4x256xbf16, #tpu.memory_space<vmem>>, vector<1x4x256xbf16>,
    return
  }
  func.func @transform_0(%arg0: i32) -> (i32, i32, i32) {
    %c0_i32 = arith.constant 0 : i32
    %c0_i32_0 = arith.constant 0 : i32
    %c0_i32_1 = arith.constant 0 : i32
    return %arg0, %c0_i32, %c0_i32_0 : i32, i32, i32
  }
  func.func @transform_1(%arg0: i32) -> (i32, i32) {
    %c0_i32 = arith.constant 0 : i32
    %c0_i32_0 = arith.constant 0 : i32
    %c0_i32_1 = arith.constant 0 : i32
    return %c0_i32, %c0_i32_0 : i32, i32
  }
  func.func @transform_2(%arg0: i32) -> (i32, i32) {
    %c0_i32 = arith.constant 0 : i32
    %c0_i32_0 = arith.constant 0 : i32
    %c0_i32_1 = arith.constant 0 : i32
    return %c0_i32, %c0_i32_0 : i32, i32
  }
  func.func @transform_3(%arg0: i32) -> (i32, i32, i32) {
    %c0_i32 = arith.constant 0 : i32
    %c0_i32_0 = arith.constant 0 : i32
    %c0_i32_1 = arith.constant 0 : i32
    return %arg0, %c0_i32, %c0_i32_0 : i32, i32, i32
  }
}

module attributes {stable_mosaic.version = 11 : i64} {
  func.func @kernel(%arg0: i32, %arg1: memref<1x4x290xbf16, #tpu.memory_space<vmem>>, %arg2: memref<1x4x290xbf16, #tpu.memory_space<vmem>>, %arg3: memref<4x72xbf16, #tpu.memory_space<vmem>>, %arg4: memref<4x1xf32, #tpu.memory_space<vmem>>, %arg5: memref<1x4x256xbf16, #tpu.memory_space<vmem>>, %arg6: memref<72x256xbf16, #tpu.memory_space<vmem>>) attributes {dimension_semantics = [#tpu.dimension_semantics<parallel>], iteration_bounds = array<i64: 2>, scalar_prefetch = 0 : i64, scratch_operands = 1 : i64, tpu.core_type = #tpu.core_type<tc>, window_params = [{transform_indices = @transform_0, window_bounds = array<i64: 1, 4, 290>}, {transform_indices = @transform_1, window_bounds = array<i64: 1, 4, 290>}, {pipeline_mode = #tpu.pipeline_mode<synchronous>, transform_indices = @transform_2, window_bounds = array<i64: 4, 72>}, {pipeline_mode = #tpu.pipeline_mode<synchronous>, transform_indices = @transform_3, window_bounds = array<i64: 4, 1>}, {transform_indices = @transform_4, window_bounds = array<i64: 1, 4, 256>}]} {
    %0 = tpu.iota {dimensions = array<i32: 1>} : vector<1x256xi32>
    %c16_i32 = arith.constant 16 : i32
    %c0_i32 = arith.constant 0 : i32
    %1 = arith.cmpi eq, %c16_i32, %c0_i32 : i32
    %c1_i32 = arith.constant 1 : i32
    %2 = arith.select %1, %c1_i32, %c16_i32 : i32
    %3 = vector.broadcast %2 : i32 to vector<1x256xi32>
    %4 = arith.remsi %0, %3 : vector<1x256xi32>
    %c0_i32_0 = arith.constant 0 : i32
    %5 = vector.broadcast %c0_i32_0 : i32 to vector<1x256xi32>
    %6 = arith.cmpi ne, %4, %5 : vector<1x256xi32>
    %c0_i32_1 = arith.constant 0 : i32
    %7 = vector.broadcast %c0_i32_1 : i32 to vector<1x256xi32>
    %8 = arith.cmpi slt, %4, %7 : vector<1x256xi32>
    %c0_i32_2 = arith.constant 0 : i32
    %9 = arith.cmpi slt, %2, %c0_i32_2 : i32
    %10 = vector.broadcast %9 : i1 to vector<1x256xi1>
    %11 = vector.broadcast %10 : vector<1x256xi1> to vector<1x256xi1>
    %12 = arith.xori %8, %11 : vector<1x256xi1>
    %13 = arith.andi %12, %6 : vector<1x256xi1>
    %14 = vector.broadcast %2 : i32 to vector<1x256xi32>
    %15 = arith.addi %4, %14 : vector<1x256xi32>
    %16 = arith.select %13, %15, %4 : vector<1x256xi1>, vector<1x256xi32>
    %c0_i32_3 = arith.constant 0 : i32
    %17 = vector.broadcast %c0_i32_3 : i32 to vector<1x256xi32>
    %18 = arith.cmpi sgt, %16, %17 : vector<1x256xi32>
    %cst = arith.constant 1.000000e+00 : f32
    %cst_4 = arith.constant 0.000000e+00 : f32
    %19 = vector.broadcast %cst : f32 to vector<1x256xf32>
    %20 = vector.broadcast %cst_4 : f32 to vector<1x256xf32>
    %21 = arith.select %18, %19, %20 : vector<1x256xi1>, vector<1x256xf32>
    %22 = arith.truncf %21 : vector<1x256xf32> to vector<1x256xbf16>
    %c15_i32 = arith.constant 15 : i32
    %23 = vector.broadcast %c15_i32 : i32 to vector<1x256xi32>
    %24 = arith.cmpi slt, %16, %23 : vector<1x256xi32>
    %cst_5 = arith.constant 1.000000e+00 : f32
    %cst_6 = arith.constant 0.000000e+00 : f32
    %25 = vector.broadcast %cst_5 : f32 to vector<1x256xf32>
    %26 = vector.broadcast %cst_6 : f32 to vector<1x256xf32>
    %27 = arith.select %24, %25, %26 : vector<1x256xi1>, vector<1x256xf32>
    %28 = arith.truncf %27 : vector<1x256xf32> to vector<1x256xbf16>
    %c0 = arith.constant 0 : index
    %c0_7 = arith.constant 0 : index
    %c0_8 = arith.constant 0 : index
    %29 = vector.load %arg1[%c0, %c0_7, %c0_8] : memref<1x4x290xbf16, #tpu.memory_space<vmem>>, vector<1x4x256xbf16>
    %30 = vector.shape_cast %29 : vector<1x4x256xbf16> to vector<4x256xbf16>
    %31 = vector.broadcast %22 : vector<1x256xbf16> to vector<4x256xbf16>
    %32 = arith.mulf %30, %31 : vector<4x256xbf16>
    %c0_9 = arith.constant 0 : index
    %c0_10 = arith.constant 0 : index
    %33 = vector.load %arg6[%c0_9, %c0_10] : memref<72x256xbf16, #tpu.memory_space<vmem>>, vector<4x256xbf16>
    tpu.vector_store %arg6[%c0_9, %c0_10], %32 {strides = array<i32>} : memref<72x256xbf16, #tpu.memory_space<vmem>>, vector<4x256xbf16>,
    %c0_11 = arith.constant 0 : index
    %c0_12 = arith.constant 0 : index
    %c1 = arith.constant 1 : index
    %34 = vector.load %arg1[%c0_11, %c0_12, %c1] : memref<1x4x290xbf16, #tpu.memory_space<vmem>>, vector<1x4x256xbf16>
    %35 = vector.shape_cast %34 : vector<1x4x256xbf16> to vector<4x256xbf16>
    %c4 = arith.constant 4 : index
    %c0_13 = arith.constant 0 : index
    %36 = vector.load %arg6[%c4, %c0_13] : memref<72x256xbf16, #tpu.memory_space<vmem>>, vector<4x256xbf16>
    tpu.vector_store %arg6[%c4, %c0_13], %35 {strides = array<i32>} : memref<72x256xbf16, #tpu.memory_space<vmem>>, vector<4x256xbf16>,
    %c0_14 = arith.constant 0 : index
    %c0_15 = arith.constant 0 : index
    %c2 = arith.constant 2 : index
    %37 = vector.load %arg1[%c0_14, %c0_15, %c2] : memref<1x4x290xbf16, #tpu.memory_space<vmem>>, vector<1x4x256xbf16>
    %38 = vector.shape_cast %37 : vector<1x4x256xbf16> to vector<4x256xbf16>
    %39 = vector.broadcast %28 : vector<1x256xbf16> to vector<4x256xbf16>
    %40 = arith.mulf %38, %39 : vector<4x256xbf16>
    %c8 = arith.constant 8 : index
    %c0_16 = arith.constant 0 : index
    %41 = vector.load %arg6[%c8, %c0_16] : memref<72x256xbf16, #tpu.memory_space<vmem>>, vector<4x256xbf16>
    tpu.vector_store %arg6[%c8, %c0_16], %40 {strides = array<i32>} : memref<72x256xbf16, #tpu.memory_space<vmem>>, vector<4x256xbf16>,
    %c0_17 = arith.constant 0 : index
    %c0_18 = arith.constant 0 : index
    %c16 = arith.constant 16 : index
    %42 = vector.load %arg1[%c0_17, %c0_18, %c16] : memref<1x4x290xbf16, #tpu.memory_space<vmem>>, vector<1x4x256xbf16>
    %43 = vector.shape_cast %42 : vector<1x4x256xbf16> to vector<4x256xbf16>
    %44 = vector.broadcast %22 : vector<1x256xbf16> to vector<4x256xbf16>
    %45 = arith.mulf %43, %44 : vector<4x256xbf16>
    %c12 = arith.constant 12 : index
    %c0_19 = arith.constant 0 : index
    %46 = vector.load %arg6[%c12, %c0_19] : memref<72x256xbf16, #tpu.memory_space<vmem>>, vector<4x256xbf16>
    tpu.vector_store %arg6[%c12, %c0_19], %45 {strides = array<i32>} : memref<72x256xbf16, #tpu.memory_space<vmem>>, vector<4x256xbf16>,
    %c0_20 = arith.constant 0 : index
    %c0_21 = arith.constant 0 : index
    %c17 = arith.constant 17 : index
    %47 = vector.load %arg1[%c0_20, %c0_21, %c17] : memref<1x4x290xbf16, #tpu.memory_space<vmem>>, vector<1x4x256xbf16>
    %48 = vector.shape_cast %47 : vector<1x4x256xbf16> to vector<4x256xbf16>
    %c16_22 = arith.constant 16 : index
    %c0_23 = arith.constant 0 : index
    %49 = vector.load %arg6[%c16_22, %c0_23] : memref<72x256xbf16, #tpu.memory_space<vmem>>, vector<4x256xbf16>
    tpu.vector_store %arg6[%c16_22, %c0_23], %48 {strides = array<i32>} : memref<72x256xbf16, #tpu.memory_space<vmem>>, vector<4x256xbf16>,
    %c0_24 = arith.constant 0 : index
    %c0_25 = arith.constant 0 : index
    %c18 = arith.constant 18 : index
    %50 = vector.load %arg1[%c0_24, %c0_25, %c18] : memref<1x4x290xbf16, #tpu.memory_space<vmem>>, vector<1x4x256xbf16>
    %51 = vector.shape_cast %50 : vector<1x4x256xbf16> to vector<4x256xbf16>
    %52 = vector.broadcast %28 : vector<1x256xbf16> to vector<4x256xbf16>
    %53 = arith.mulf %51, %52 : vector<4x256xbf16>
    %c20 = arith.constant 20 : index
    %c0_26 = arith.constant 0 : index
    %54 = vector.load %arg6[%c20, %c0_26] : memref<72x256xbf16, #tpu.memory_space<vmem>>, vector<4x256xbf16>
    tpu.vector_store %arg6[%c20, %c0_26], %53 {strides = array<i32>} : memref<72x256xbf16, #tpu.memory_space<vmem>>, vector<4x256xbf16>,
    %c0_27 = arith.constant 0 : index
    %c0_28 = arith.constant 0 : index
    %c32 = arith.constant 32 : index
    %55 = vector.load %arg1[%c0_27, %c0_28, %c32] : memref<1x4x290xbf16, #tpu.memory_space<vmem>>, vector<1x4x256xbf16>
    %56 = vector.shape_cast %55 : vector<1x4x256xbf16> to vector<4x256xbf16>
    %57 = vector.broadcast %22 : vector<1x256xbf16> to vector<4x256xbf16>
    %58 = arith.mulf %56, %57 : vector<4x256xbf16>
    %c24 = arith.constant 24 : index
    %c0_29 = arith.constant 0 : index
    %59 = vector.load %arg6[%c24, %c0_29] : memref<72x256xbf16, #tpu.memory_space<vmem>>, vector<4x256xbf16>
    tpu.vector_store %arg6[%c24, %c0_29], %58 {strides = array<i32>} : memref<72x256xbf16, #tpu.memory_space<vmem>>, vector<4x256xbf16>,
    %c0_30 = arith.constant 0 : index
    %c0_31 = arith.constant 0 : index
    %c33 = arith.constant 33 : index
    %60 = vector.load %arg1[%c0_30, %c0_31, %c33] : memref<1x4x290xbf16, #tpu.memory_space<vmem>>, vector<1x4x256xbf16>
    %61 = vector.shape_cast %60 : vector<1x4x256xbf16> to vector<4x256xbf16>
    %c28 = arith.constant 28 : index
    %c0_32 = arith.constant 0 : index
    %62 = vector.load %arg6[%c28, %c0_32] : memref<72x256xbf16, #tpu.memory_space<vmem>>, vector<4x256xbf16>
    tpu.vector_store %arg6[%c28, %c0_32], %61 {strides = array<i32>} : memref<72x256xbf16, #tpu.memory_space<vmem>>, vector<4x256xbf16>,
    %c0_33 = arith.constant 0 : index
    %c0_34 = arith.constant 0 : index
    %c34 = arith.constant 34 : index
    %63 = vector.load %arg1[%c0_33, %c0_34, %c34] : memref<1x4x290xbf16, #tpu.memory_space<vmem>>, vector<1x4x256xbf16>
    %64 = vector.shape_cast %63 : vector<1x4x256xbf16> to vector<4x256xbf16>
    %65 = vector.broadcast %28 : vector<1x256xbf16> to vector<4x256xbf16>
    %66 = arith.mulf %64, %65 : vector<4x256xbf16>
    %c32_35 = arith.constant 32 : index
    %c0_36 = arith.constant 0 : index
    %67 = vector.load %arg6[%c32_35, %c0_36] : memref<72x256xbf16, #tpu.memory_space<vmem>>, vector<4x256xbf16>
    tpu.vector_store %arg6[%c32_35, %c0_36], %66 {strides = array<i32>} : memref<72x256xbf16, #tpu.memory_space<vmem>>, vector<4x256xbf16>,
    %c0_37 = arith.constant 0 : index
    %c0_38 = arith.constant 0 : index
    %c0_39 = arith.constant 0 : index
    %68 = vector.load %arg2[%c0_37, %c0_38, %c0_39] : memref<1x4x290xbf16, #tpu.memory_space<vmem>>, vector<1x4x256xbf16>
    %69 = vector.shape_cast %68 : vector<1x4x256xbf16> to vector<4x256xbf16>
    %70 = vector.broadcast %22 : vector<1x256xbf16> to vector<4x256xbf16>
    %71 = arith.mulf %69, %70 : vector<4x256xbf16>
    %c36 = arith.constant 36 : index
    %c0_40 = arith.constant 0 : index
    %72 = vector.load %arg6[%c36, %c0_40] : memref<72x256xbf16, #tpu.memory_space<vmem>>, vector<4x256xbf16>
    tpu.vector_store %arg6[%c36, %c0_40], %71 {strides = array<i32>} : memref<72x256xbf16, #tpu.memory_space<vmem>>, vector<4x256xbf16>,
    %c0_41 = arith.constant 0 : index
    %c0_42 = arith.constant 0 : index
    %c1_43 = arith.constant 1 : index
    %73 = vector.load %arg2[%c0_41, %c0_42, %c1_43] : memref<1x4x290xbf16, #tpu.memory_space<vmem>>, vector<1x4x256xbf16>
    %74 = vector.shape_cast %73 : vector<1x4x256xbf16> to vector<4x256xbf16>
    %c40 = arith.constant 40 : index
    %c0_44 = arith.constant 0 : index
    %75 = vector.load %arg6[%c40, %c0_44] : memref<72x256xbf16, #tpu.memory_space<vmem>>, vector<4x256xbf16>
    tpu.vector_store %arg6[%c40, %c0_44], %74 {strides = array<i32>} : memref<72x256xbf16, #tpu.memory_space<vmem>>, vector<4x256xbf16>,
    %c0_45 = arith.constant 0 : index
    %c0_46 = arith.constant 0 : index
    %c2_47 = arith.constant 2 : index
    %76 = vector.load %arg2[%c0_45, %c0_46, %c2_47] : memref<1x4x290xbf16, #tpu.memory_space<vmem>>, vector<1x4x256xbf16>
    %77 = vector.shape_cast %76 : vector<1x4x256xbf16> to vector<4x256xbf16>
    %78 = vector.broadcast %28 : vector<1x256xbf16> to vector<4x256xbf16>
    %79 = arith.mulf %77, %78 : vector<4x256xbf16>
    %c44 = arith.constant 44 : index
    %c0_48 = arith.constant 0 : index
    %80 = vector.load %arg6[%c44, %c0_48] : memref<72x256xbf16, #tpu.memory_space<vmem>>, vector<4x256xbf16>
    tpu.vector_store %arg6[%c44, %c0_48], %79 {strides = array<i32>} : memref<72x256xbf16, #tpu.memory_space<vmem>>, vector<4x256xbf16>,
    %c0_49 = arith.constant 0 : index
    %c0_50 = arith.constant 0 : index
    %c16_51 = arith.constant 16 : index
    %81 = vector.load %arg2[%c0_49, %c0_50, %c16_51] : memref<1x4x290xbf16, #tpu.memory_space<vmem>>, vector<1x4x256xbf16>
    %82 = vector.shape_cast %81 : vector<1x4x256xbf16> to vector<4x256xbf16>
    %83 = vector.broadcast %22 : vector<1x256xbf16> to vector<4x256xbf16>
    %84 = arith.mulf %82, %83 : vector<4x256xbf16>
    %c48 = arith.constant 48 : index
    %c0_52 = arith.constant 0 : index
    %85 = vector.load %arg6[%c48, %c0_52] : memref<72x256xbf16, #tpu.memory_space<vmem>>, vector<4x256xbf16>
    tpu.vector_store %arg6[%c48, %c0_52], %84 {strides = array<i32>} : memref<72x256xbf16, #tpu.memory_space<vmem>>, vector<4x256xbf16>,
    %c0_53 = arith.constant 0 : index
    %c0_54 = arith.constant 0 : index
    %c17_55 = arith.constant 17 : index
    %86 = vector.load %arg2[%c0_53, %c0_54, %c17_55] : memref<1x4x290xbf16, #tpu.memory_space<vmem>>, vector<1x4x256xbf16>
    %87 = vector.shape_cast %86 : vector<1x4x256xbf16> to vector<4x256xbf16>
    %c52 = arith.constant 52 : index
    %c0_56 = arith.constant 0 : index
    %88 = vector.load %arg6[%c52, %c0_56] : memref<72x256xbf16, #tpu.memory_space<vmem>>, vector<4x256xbf16>
    tpu.vector_store %arg6[%c52, %c0_56], %87 {strides = array<i32>} : memref<72x256xbf16, #tpu.memory_space<vmem>>, vector<4x256xbf16>,
    %c0_57 = arith.constant 0 : index
    %c0_58 = arith.constant 0 : index
    %c18_59 = arith.constant 18 : index
    %89 = vector.load %arg2[%c0_57, %c0_58, %c18_59] : memref<1x4x290xbf16, #tpu.memory_space<vmem>>, vector<1x4x256xbf16>
    %90 = vector.shape_cast %89 : vector<1x4x256xbf16> to vector<4x256xbf16>
    %91 = vector.broadcast %28 : vector<1x256xbf16> to vector<4x256xbf16>
    %92 = arith.mulf %90, %91 : vector<4x256xbf16>
    %c56 = arith.constant 56 : index
    %c0_60 = arith.constant 0 : index
    %93 = vector.load %arg6[%c56, %c0_60] : memref<72x256xbf16, #tpu.memory_space<vmem>>, vector<4x256xbf16>
    tpu.vector_store %arg6[%c56, %c0_60], %92 {strides = array<i32>} : memref<72x256xbf16, #tpu.memory_space<vmem>>, vector<4x256xbf16>,
    %c0_61 = arith.constant 0 : index
    %c0_62 = arith.constant 0 : index
    %c32_63 = arith.constant 32 : index
    %94 = vector.load %arg2[%c0_61, %c0_62, %c32_63] : memref<1x4x290xbf16, #tpu.memory_space<vmem>>, vector<1x4x256xbf16>
    %95 = vector.shape_cast %94 : vector<1x4x256xbf16> to vector<4x256xbf16>
    %96 = vector.broadcast %22 : vector<1x256xbf16> to vector<4x256xbf16>
    %97 = arith.mulf %95, %96 : vector<4x256xbf16>
    %c60 = arith.constant 60 : index
    %c0_64 = arith.constant 0 : index
    %98 = vector.load %arg6[%c60, %c0_64] : memref<72x256xbf16, #tpu.memory_space<vmem>>, vector<4x256xbf16>
    tpu.vector_store %arg6[%c60, %c0_64], %97 {strides = array<i32>} : memref<72x256xbf16, #tpu.memory_space<vmem>>, vector<4x256xbf16>,
    %c0_65 = arith.constant 0 : index
    %c0_66 = arith.constant 0 : index
    %c33_67 = arith.constant 33 : index
    %99 = vector.load %arg2[%c0_65, %c0_66, %c33_67] : memref<1x4x290xbf16, #tpu.memory_space<vmem>>, vector<1x4x256xbf16>
    %100 = vector.shape_cast %99 : vector<1x4x256xbf16> to vector<4x256xbf16>
    %c64 = arith.constant 64 : index
    %c0_68 = arith.constant 0 : index
    %101 = vector.load %arg6[%c64, %c0_68] : memref<72x256xbf16, #tpu.memory_space<vmem>>, vector<4x256xbf16>
    tpu.vector_store %arg6[%c64, %c0_68], %100 {strides = array<i32>} : memref<72x256xbf16, #tpu.memory_space<vmem>>, vector<4x256xbf16>,
    %c0_69 = arith.constant 0 : index
    %c0_70 = arith.constant 0 : index
    %c34_71 = arith.constant 34 : index
    %102 = vector.load %arg2[%c0_69, %c0_70, %c34_71] : memref<1x4x290xbf16, #tpu.memory_space<vmem>>, vector<1x4x256xbf16>
    %103 = vector.shape_cast %102 : vector<1x4x256xbf16> to vector<4x256xbf16>
    %104 = vector.broadcast %28 : vector<1x256xbf16> to vector<4x256xbf16>
    %105 = arith.mulf %103, %104 : vector<4x256xbf16>
    %c68 = arith.constant 68 : index
    %c0_72 = arith.constant 0 : index
    %106 = vector.load %arg6[%c68, %c0_72] : memref<72x256xbf16, #tpu.memory_space<vmem>>, vector<4x256xbf16>
    tpu.vector_store %arg6[%c68, %c0_72], %105 {strides = array<i32>} : memref<72x256xbf16, #tpu.memory_space<vmem>>, vector<4x256xbf16>,
    %c0_73 = arith.constant 0 : index
    %c0_74 = arith.constant 0 : index
    %107 = vector.load %arg3[%c0_73, %c0_74] : memref<4x72xbf16, #tpu.memory_space<vmem>>, vector<4x72xbf16>
    %c0_75 = arith.constant 0 : index
    %c0_76 = arith.constant 0 : index
    %108 = vector.load %arg6[%c0_75, %c0_76] : memref<72x256xbf16, #tpu.memory_space<vmem>>, vector<72x256xbf16>
    %cst_77 = arith.constant dense<0.000000e+00> : vector<4x256xf32>
    %109 = tpu.matmul %107, %108, %cst_77 {dimension_numbers = #tpu.dot_dimension_numbers<[1], [0], [0], [1], [0, 0, 1, 1], [], []>} : vector<4x72xbf16>, vector<72x256xbf16>, vector<4x256xf32> -> vector<4x256xf32>
    %c0_78 = arith.constant 0 : index
    %c0_79 = arith.constant 0 : index
    %110 = vector.load %arg4[%c0_78, %c0_79] : memref<4x1xf32, #tpu.memory_space<vmem>>, vector<4x1xf32>
    %111 = vector.broadcast %110 : vector<4x1xf32> to vector<4x256xf32>
    %112 = arith.addf %109, %111 : vector<4x256xf32>
    %cst_80 = arith.constant 0.000000e+00 : f32
    %113 = vector.broadcast %cst_80 : f32 to vector<4x256xf32>
    %114 = arith.maximumf %112, %113 : vector<4x256xf32>
    %115 = arith.truncf %114 : vector<4x256xf32> to vector<4x256xbf16>
    %c0_81 = arith.constant 0 : index
    %c0_82 = arith.constant 0 : index
    %c0_83 = arith.constant 0 : index
    %116 = vector.load %arg5[%c0_81, %c0_82, %c0_83] : memref<1x4x256xbf16, #tpu.memory_space<vmem>>, vector<1x4x256xbf16>
    %117 = vector.shape_cast %116 : vector<1x4x256xbf16> to vector<4x256xbf16>
    %118 = vector.shape_cast %115 : vector<4x256xbf16> to vector<1x4x256xbf16>
    tpu.vector_store %arg5[%c0_81, %c0_82, %c0_83], %118 {strides = array<i32>} : memref<1x4x256xbf16, #tpu.memory_space<vmem>>, vector<1x4x256xbf16>,
    return
  }
  func.func @transform_0(%arg0: i32) -> (i32, i32, i32) {
    %c0_i32 = arith.constant 0 : i32
    %c0_i32_0 = arith.constant 0 : i32
    %c0_i32_1 = arith.constant 0 : i32
    return %arg0, %c0_i32, %c0_i32_0 : i32, i32, i32
  }
  func.func @transform_1(%arg0: i32) -> (i32, i32, i32) {
    %c0_i32 = arith.constant 0 : i32
    %c0_i32_0 = arith.constant 0 : i32
    %c0_i32_1 = arith.constant 0 : i32
    return %arg0, %c0_i32, %c0_i32_0 : i32, i32, i32
  }
  func.func @transform_2(%arg0: i32) -> (i32, i32) {
    %c0_i32 = arith.constant 0 : i32
    %c0_i32_0 = arith.constant 0 : i32
    %c0_i32_1 = arith.constant 0 : i32
    return %c0_i32, %c0_i32_0 : i32, i32
  }
  func.func @transform_3(%arg0: i32) -> (i32, i32) {
    %c0_i32 = arith.constant 0 : i32
    %c0_i32_0 = arith.constant 0 : i32
    %c0_i32_1 = arith.constant 0 : i32
    return %c0_i32, %c0_i32_0 : i32, i32
  }
  func.func @transform_4(%arg0: i32) -> (i32, i32, i32) {
    %c0_i32 = arith.constant 0 : i32
    %c0_i32_0 = arith.constant 0 : i32
    %c0_i32_1 = arith.constant 0 : i32
    return %arg0, %c0_i32, %c0_i32_0 : i32, i32, i32
  }
}

</mosaic_0001>

<bundles_post_ra>
// kernel: cycle_conv_block_pallas.4
= control target key start
LH: loop header
LB: loop body
LE: loop exit
PB: predicated region body
PF: predicated region fallthrough
CT: control target
= control target key end

     0   :  { %s770_s12 = smov 0   ;;  %s838_s0 = inlined_call_operand.vmem [shape: bf16[2,4,290], index: 0, kind: input, shape index: {}]   ;;  %s839_s1 = inlined_call_operand.vmem [shape: bf16[4,36], index: 1, kind: input, shape index: {}]   ;;  %s840_s2 = inlined_call_operand.vmem [shape: f32[4,1], index: 2, kind: input, shape index: {}]   ;;  %s841_s3 = inlined_call_operand.vmem [shape: bf16[2,4,256], index: 3, kind: output, shape index: {}]  }
   0x1 LB: > { %s664_s13 = sadd.s32 4294967295, %s732_s12   ;;  %p668_p0 = scmp.ge.s32.totalorder %s732_s12, 1  ;;  %s732_s12 = sphi %s770_s12, %s13_s12  }
   0x2   : > { %p137_p1 = scmp.lt.s32.totalorder %s732_s12, 3 }
   0x4   : > { %p138_p2 = pnand %p668_p0, %p137_p1 }
   0x5   : > { %p161_p3 = scmp.lt.s32.totalorder (!%p138_p2), %s664_s13, 1  ;;  %s736_s18 = smov (!%p138_p2), 34  }
   0x6   : > { %141 = sbr.rel (%p138_p2) target bundleno = 500 (0x1f4), region = 32  ;;  %s737_s19 = smov (!%p138_p2), 32  }
   0x7   : > { %s738_s20 = smov (!%p138_p2), 18   ;;  %s739_s21 = smov (!%p138_p2), 2  }
   0x8   : > { %s740_s22 = smov (!%p138_p2), 16   ;;  %s741_s23 = smov (!%p138_p2), 111  }
   0x9   : > { %s742_s24 = smov (!%p138_p2), 95   ;;  %s743_s25 = smov (!%p138_p2), 127  }
   0xa   : > { %s744_s26 = smov (!%p138_p2), 94   ;;  %s745_s27 = smov (!%p138_p2), 110  }
   0xb   : > { %v172_v0 = vlaneseq  ;;  %v734_v1 = vmov 1983009808   ;;  %s843_s13 = smov (!%p161_p3, %s664_s13), 1  ;;  %v735_v9 = vmov 0.0   ;;  %vm473_vm4 = vcmask 277504   ;;  %s746_s28 = smov 96  }
   0xc   : > { %v216_v2 = vunpack.c.l.s4 %v734_v1  ;;  %s688_s14 = smul.u32 6, %s843_s13  ;;  %vm410_vm5 = vcmask 261120   ;;  %vm375_vm6 = vcmask 146432   ;;  %vm277_vm7 = vcmask 15360   ;;  %s747_s29 = smov 126  }
   0xd   : > { %v173_v3 = vand.u32 127, %v172_v0  ;;  %v219_v7 = vshrl.u32 %v172_v0, 7  ;;  %vm312_vm8 = vcmask 130048   ;;  %vm257_vm9 = vcmask 1043456   ;;  %s748_s30 = smov 112   ;;  %s687_s8 = sshll.u32 %s843_s13, 2 }
   0xe   : > { %v217_v6 = vunpack.c.0.s8 %v216_v2  ;;  %s786_s17 = scalar_lea.vmem %s838_s0, %s688_s14  ;;  %vm367_vm10 = vcmask 908288   ;;  %vm465_vm11 = vcmask 777216   ;;  %vm259_vm12 = vcmask 1039360   ;;  %s170_s11 = scalar_lea.vmem %s841_s3, %s687_s8 }
   0xf   : > { %v174_v4 = vadd.s32 128, %v173_v3  ;;  %v179_v5 = vand.u32 15, %v173_v3  ;;  %v211_v17 = vld [vmem:[%s786_s17] sm:$0xf]  ;;  %vm500_vm13 = vcmask 769024   ;;  %vm437_vm14 = vcmask 785408  }
  0x10   : > { %v781_v12 = vsub.s32 %v217_v6, %v219_v7  ;;  %v343_v21 = vld [vmem:[%s786_s17] sm:$0x3f]  ;;  %vm402_vm15 = vcmask 900096  }
  0x11   : > { %v186_v8 = vand.u32 15, %v174_v4  ;;  %vm205_vm0 = vcmp.lt.s32.totalorder %v179_v5, 15  ;;  %vm199_vm1 = vcmp.gt.s32.totalorder %v179_v5, 0  ;;  %v441_v22 = vld [vmem:[%s786_s17] sm:$0x3f]  ;;  %v345_v24 = vcombine.high %v343_v21, %v343_v21 }
  0x12   : > { %v207_v10 = vsel %vm205_vm0, 1.0, %v735_v9  ;;  %v201_v11 = vsel %vm199_vm1, 1.0, %v735_v9  ;;  %v352_v23 = vrot.slane %v343_v21, %v781_v12  ;;  %v443_v25 = vcombine.low %v441_v22, %v441_v22  ;;  %v234_v26 = vld [vmem:[%s786_s17] sm:$0x3f] }
  0x13   : > { %vm206_vm2 = vcmp.lt.s32.totalorder %v186_v8, 15  ;;  %vm200_vm3 = vcmp.gt.s32.totalorder %v186_v8, 0  ;;  %v359_v27 = vrot.slane %v345_v24, %v781_v12  ;;  %v236_v29 = vcombine.low %v234_v26, %v234_v26  ;;  %v469_v35 = vld [vmem:[%s786_s17] sm:$0x3f] }
  0x14   : > { %v208_v13 = vsel %vm206_vm2, 1.0, %v735_v9  ;;  %v202_v14 = vsel %vm200_vm3, 1.0, %v735_v9  ;;  %v450_v28 = vrot.slane %v443_v25, %v781_v12  ;;  %v457_v30 = vrot.slane %v441_v22, %v781_v12  ;;  %v406_v37 = vld [vmem:[%s786_s17] sm:$0x3f] }
  0x15   : > { %v674_v15 = vpack.c.bf16 %v208_v13, %v207_v10  ;;  %v672_v16 = vpack.c.bf16 %v202_v14, %v201_v11  ;;  %v243_v31 = vrot.slane %v236_v29, %v781_v12  ;;  %v250_v32 = vrot.slane %v234_v26, %v781_v12  ;;  %v371_v45 = vld [vmem:[%s786_s17] sm:$0x3f] }
  0x16   : > { %v263_v47 = vld [vmem:[%s786_s17] sm:$0x3f]  ;;  %vm304_vm0 = vcmask 1031168   ;;  %vm339_vm1 = vcmask 916480   ;;  %vm545_vm2 = vcmask 1041408   ;;  %vm541_vm3 = vcmask 293888  }
  0x17   : > { %v273_v18 = vrot.slane %v674_v15, %v781_v12  ;;  %v221_v19 = vrot.slane %v672_v16, %v781_v12  ;;  %v308_v57 = vld [vmem:[%s786_s17] sm:$0x3f] }
  0x18   : > { %v510_v29 = vld [vmem:[%s840_s2] sm:$0xf] }
  0x19   : > { %470 = vrot.lane.b32.xlu0 %v273_v18, %s736_s18  ;;  %407 = vrot.lane.b32.xlu1 %v221_v19, %s737_s19  ;;  %v223_v20 = vmul.bf16 %v221_v19, %v211_v17 }
  0x1b   : > { %673 = vst.sshfl [vmem:[#allocation2] sm:$0xf pattern:$0x76325410] %v223_v20 }
  0x1d   : > { %372 = vrot.lane.b32.xlu0 %v273_v18, %s738_s20  ;;  %274 = vrot.lane.b32.xlu1 %v273_v18, %s739_s21 }
  0x21   : > { %309 = vrot.lane.b32.xlu0 %v221_v19, %s740_s22  ;;  %360 = vrot.lane.b32.xlu1 %v352_v23, %s741_s23 }
  0x25   : > { %362 = vrot.lane.b32.xlu0 %v359_v27, %s741_s23  ;;  %458 = vrot.lane.b32.xlu1 %v450_v28, %s742_s24  ;;  %v749_v28 = vmov 0  }
  0x26   : > { %584 = vmatprep.mubr.bf16.mxu0 %v749_v28  ;;  %713 = vset.pattern.permute.xlu1 %v749_v28 }
  0x27   : > { %714 = vset.pattern.permute.xlu0 %v749_v28 }
  0x29   : > { %460 = vrot.lane.b32.xlu0 %v457_v30, %s742_s24  ;;  %251 = vrot.lane.b32.xlu1 %v243_v31, %s743_s25 }
  0x2d   : > { %253 = vrot.lane.b32.xlu0 %v250_v32, %s743_s25 }
  0x8b   : > { %v471_v33 = vpop.permute.xlu0 %470  ;;  %v408_v34 = vpop.permute.xlu1 %407 }
  0x8c   : > { %v472_v36 = vrot.slane %v471_v33, 6  ;;  %v409_v38 = vrot.slane %v408_v34, 6 }
  0x8e   : > { %v474_v39 = vsel %vm473_vm4, %v472_v36, %v471_v33  ;;  %v411_v40 = vsel %vm410_vm5, %v409_v38, %v408_v34 }
  0x8f   : > { %v476_v41 = vmul.bf16 %v474_v39, %v469_v35  ;;  %v373_v42 = vpop.permute.xlu0 %372  ;;  %v413_v43 = vmul.bf16 %v411_v40, %v406_v37  ;;  %v275_v44 = vpop.permute.xlu1 %274 }
  0x90   : > { %v374_v46 = vrot.slane %v373_v42, 6  ;;  %v276_v48 = vrot.slane %v275_v44, 6 }
  0x91   : > { %v485_v49 = vrot.slane %v476_v41, %v781_v12  ;;  %v422_v54 = vrot.slane %v413_v43, %v781_v12  ;;  %v478_v59 = vcombine.high %v476_v41, %v476_v41  ;;  %v415_v5 = vcombine.high %v413_v43, %v413_v43 }
  0x92   : > { %v376_v50 = vsel %vm375_vm6, %v374_v46, %v373_v42  ;;  %v278_v51 = vsel %vm277_vm7, %v276_v48, %v275_v44 }
  0x93   : > { %v378_v52 = vmul.bf16 %v376_v50, %v371_v45  ;;  %v280_v53 = vmul.bf16 %v278_v51, %v263_v47  ;;  %493 = vrot.lane.b32.xlu1 %v485_v49, %s744_s26  ;;  %v310_v55 = vpop.permute.xlu0 %309  ;;  %v361_v56 = vpop.permute.xlu1 %360  ;;  %v492_v6 = vrot.slane %v478_v59, %v781_v12  ;;  %v429_v16 = vrot.slane %v415_v5, %v781_v12 }
  0x94   : > { %v311_v58 = vrot.slane %v310_v55, 6  ;;  %v364_v62 = vrot.slane %v361_v56, 4 }
  0x95   : > { %v394_v60 = vrot.slane %v378_v52, %v781_v12  ;;  %v289_v0 = vrot.slane %v280_v53, %v781_v12  ;;  %v380_v4 = vcombine.low %v378_v52, %v378_v52  ;;  %v282_v15 = vcombine.high %v280_v53, %v280_v53 }
  0x96   : > { %v313_v61 = vsel %vm312_vm8, %v311_v58, %v310_v55 }
  0x97   : > { %397 = vrot.lane.b32.xlu0 %v394_v60, %s745_s27  ;;  %430 = vrot.lane.b32.xlu1 %v422_v54, %s746_s28  ;;  %v315_v63 = vmul.bf16 %v313_v61, %v308_v57  ;;  %v363_v1 = vpop.permute.xlu0 %362  ;;  %v459_v2 = vpop.permute.xlu1 %458  ;;  %v387_v17 = vrot.slane %v380_v4, %v781_v12  ;;  %v296_v24 = vrot.slane %v282_v15, %v781_v12 }
  0x98   : > { %v365_v3 = vrot.slane %v363_v1, 4  ;;  %v462_v8 = vrot.slane %v459_v2, 4 }
  0x99   : > { %v317_v9 = vcombine.low %v315_v63, %v315_v63  ;;  %v331_v27 = vrot.slane %v315_v63, %v781_v12 }
  0x9a   : > { %v366_v7 = vsel %vm257_vm9, %v364_v62, %v365_v3  ;;  %v504_v3 = vld [vmem:[%s839_s1] sm:$0x3] }
  0x9b   : > { %495 = vrot.lane.b32.xlu0 %v492_v6, %s744_s26  ;;  %297 = vrot.lane.b32.xlu1 %v289_v0, %s747_s29  ;;  %v368_v10 = vsel %vm367_vm10, %v361_v56, %v366_v7  ;;  %v461_v11 = vpop.permute.xlu0 %460  ;;  %v252_v13 = vpop.permute.xlu1 %251  ;;  %v324_v20 = vrot.slane %v317_v9, %v781_v12 }
  0x9c   : > { %370 = vst [vmem:[#allocation2 + $0x10] sm:$0x33] %v368_v10  ;;  %v463_v14 = vrot.slane %v461_v11, 4  ;;  %v255_v19 = vrot.slane %v252_v13, 4 }
  0x9e   : > { %v464_v18 = vsel %vm257_vm9, %v462_v8, %v463_v14 }
  0x9f   : > { %432 = vrot.lane.b32.xlu0 %v429_v16, %s746_s28  ;;  %395 = vrot.lane.b32.xlu1 %v387_v17, %s745_s27  ;;  %v466_v21 = vsel %vm465_vm11, %v459_v2, %v464_v18  ;;  %v254_v22 = vpop.permute.xlu0 %253 }
  0xa0   : > { %468 = vst [vmem:[#allocation2 + $0x18] sm:$0xcc] %v466_v21  ;;  %v256_v23 = vrot.slane %v254_v22, 4 }
  0xa2   : > { %v258_v25 = vsel %vm257_vm9, %v255_v19, %v256_v23 }
  0xa3   : > { %299 = vrot.lane.b32.xlu0 %v296_v24, %s747_s29  ;;  %332 = vrot.lane.b32.xlu1 %v324_v20, %s748_s30  ;;  %v260_v26 = vsel %vm259_vm12, %v252_v13, %v258_v25 }
  0xa4   : > { %262 = vst [vmem:[#allocation2] sm:$0xcc] %v260_v26 }
  0xa7   : > { %334 = vrot.lane.b32.xlu0 %v331_v27, %s748_s30  ;;  %513 = vperm.xlu1 %713, %v510_v29  }
 0x105   : > { %v494_v30 = vpop.permute.xlu1 %493 }
 0x106   : > { %v497_v35 = vrot.slane %v494_v30, 4 }
 0x109   : > { %v398_v31 = vpop.permute.xlu0 %397  ;;  %v431_v32 = vpop.permute.xlu1 %430 }
 0x10a   : > { %v400_v40 = vrot.slane %v398_v31, 4  ;;  %v434_v41 = vrot.slane %v431_v32, 4 }
 0x10d   : > { %v496_v33 = vpop.permute.xlu0 %495  ;;  %v298_v34 = vpop.permute.xlu1 %297 }
 0x10e   : > { %v498_v36 = vrot.slane %v496_v33, 4  ;;  %v301_v49 = vrot.slane %v298_v34, 4 }
 0x110   : > { %v499_v12 = vsel %vm257_vm9, %v497_v35, %v498_v36 }
 0x111   : > { %v501_v37 = vsel %vm500_vm13, %v494_v30, %v499_v12  ;;  %v433_v38 = vpop.permute.xlu0 %432  ;;  %v396_v39 = vpop.permute.xlu1 %395 }
 0x112   : > { %503 = vst [vmem:[#allocation2 + $0x20] sm:$0x33] %v501_v37  ;;  %v435_v42 = vrot.slane %v433_v38, 4  ;;  %v399_v43 = vrot.slane %v396_v39, 4 }
 0x114   : > { %v436_v44 = vsel %vm257_vm9, %v434_v41, %v435_v42  ;;  %v401_v45 = vsel %vm257_vm9, %v399_v43, %v400_v40 }
 0x115   : > { %v438_v46 = vsel %vm437_vm14, %v431_v32, %v436_v44  ;;  %v403_v47 = vsel %vm402_vm15, %v396_v39, %v401_v45  ;;  %v300_v48 = vpop.permute.xlu0 %299  ;;  %v333_v51 = vpop.permute.xlu1 %332 }
 0x116   : > { %440 = vst [vmem:[#allocation2 + $0x18] sm:$0x33] %v438_v46  ;;  %405 = vst [vmem:[#allocation2 + $0x10] sm:$0xcc] %v403_v47  ;;  %v302_v50 = vrot.slane %v300_v48, 4  ;;  %v336_v56 = vrot.slane %v333_v51, 4 }
 0x118   : > { %v303_v52 = vsel %vm257_vm9, %v301_v49, %v302_v50 }
 0x119   : > { %v305_v53 = vsel %vm304_vm0, %v298_v34, %v303_v52  ;;  %v335_v54 = vpop.permute.xlu0 %334  ;;  %v509_v55 = vld [vmem:[#allocation2 + $0x20] sm:$0x33] }
 0x11a   : > { %307 = vst [vmem:[#allocation2 + $0x8] sm:$0x33] %v305_v53  ;;  %v337_v57 = vrot.slane %v335_v54, 4  ;;  %v680_v58 = vcombine.high %v509_v55, %v509_v55  ;;  %v679_v59 = vcombine.low %v509_v55, %v509_v55 }
 0x11c   : > { %v338_v60 = vsel %vm257_vm9, %v336_v56, %v337_v57  ;;  %681 = vmatprep.subr.msk.bf16.mxu0 %vm545_vm2, %v680_v58  ;;  %v547_v61 = vsel %vm545_vm2, %v679_v59, 0 }
 0x11d   : > { %v340_v62 = vsel %vm339_vm1, %v333_v51, %v338_v60  ;;  %563 = vmatpush1.bf16.msra.mxu0 %v547_v61  ;;  %v720_v63 = vld [vmem:[#allocation2 + $0x14] ss:$8 sps:$4 sm:$0xff]   ;;  %v722_v0 = vld [vmem:[#allocation2 + $0x10] ss:$8 sps:$4 sm:$0xff]  }
 0x11e   : > { %342 = vst [vmem:[#allocation2 + $0x8] sm:$0xcc] %v340_v62  ;;  %564 = vmatprep.subr.bf16.mxu0 %v720_v63 }
 0x121   : > { %565 = vmatpush1.bf16.msra.mxu0 %v722_v0 }
 0x122   : > { %v514_v4 = vpop.permute.xlu1 %513 }
 0x125   : > { %v723_v1 = vld [vmem:[#allocation2 + $0x4] ss:$8 sps:$4 sm:$0xff]   ;;  %v725_v2 = vld [vmem:[#allocation2] ss:$8 sps:$4 sm:$0xff]  }
 0x126   : > { %566 = vmatprep.subr.bf16.mxu0 %v723_v1 }
 0x127   : > { %567 = vmatpush1.bf16.msra.mxu0 %v725_v2 }
 0x12a   : > { %682 = vmatmul.mubr.msk.bf16.vlgmr.msra.gmra.mxu0 %vm541_vm3, %v504_v3 }
 0x1ea   : > { %v586_v5 = vpop.f32.mrf.mxu0 }
 0x1eb   : > { %v587_v6 = vadd.f32 %v586_v5, %v514_v4 }
 0x1ec   : > { %v588_v7 = vpop.f32.mrf.mxu0 }
 0x1ed   : > { %v589_v8 = vadd.f32 %v588_v7, %v514_v4  ;;  %v593_v10 = vmax.f32 %v587_v6, 0.0 }
 0x1ee   : > { %v590_v9 = vpop.f32.mrf.mxu0 }
 0x1ef   : > { %v594_v11 = vmax.f32 %v589_v8, 0.0 }
 0x1f0   : > { %v591_v13 = vpop.f32.mrf.mxu0 }
 0x1f1   : > { %v683_v14 = vpack.c.bf16 %v594_v11, %v593_v10 }
 0x1f3   : > { %684 = vst.sshfl [vmem:[%s170_s11] sm:$0x33 pattern:$0x76325410] %v683_v14 }
 0x1f4 PF: > { %s13_s12 = sadd.s32 1, %s732_s12  }
 0x1f5   : > { %p10_p4 = scmp.ge.s32.totalorder %s13_s12, 4  }
 0x1f7   :  { %12 = sbr.rel (!%p10_p4) target bundleno = 1 (0x1), region = 62 }

// kernel: cycle_conv_block_pallas.5
= control target key start
LH: loop header
LB: loop body
LE: loop exit
PB: predicated region body
PF: predicated region fallthrough
CT: control target
= control target key end

     0   :  { %s1107_s15 = smov 0   ;;  %s1275_s0 = inlined_call_operand.vmem [shape: bf16[2,4,290], index: 0, kind: input, shape index: {}]   ;;  %s1276_s1 = inlined_call_operand.vmem [shape: bf16[2,4,290], index: 1, kind: input, shape index: {}]   ;;  %s1277_s2 = inlined_call_operand.vmem [shape: bf16[4,72], index: 2, kind: input, shape index: {}]   ;;  %s1278_s3 = inlined_call_operand.vmem [shape: f32[4,1], index: 3, kind: input, shape index: {}]   ;;  %s1279_s4 = inlined_call_operand.vmem [shape: bf16[2,4,256], index: 4, kind: output, shape index: {}]  }
   0x1 LB: > { %s981_s16 = sadd.s32 4294967295, %s1064_s15   ;;  %p985_p0 = scmp.ge.s32.totalorder %s1064_s15, 1  ;;  %s1064_s15 = sphi %s1107_s15, %s14_s15  }
   0x2   : > { %p172_p1 = scmp.lt.s32.totalorder %s1064_s15, 3 }
   0x4   : > { %p173_p2 = pnand %p985_p0, %p172_p1 }
   0x5   : > { %p203_p3 = scmp.lt.s32.totalorder (!%p173_p2), %s981_s16, 1  ;;  %s1068_s24 = smov (!%p173_p2), 18  }
   0x6   : > { %176 = sbr.rel (%p173_p2) target bundleno = 522 (0x20a), region = 36  ;;  %s1069_s25 = smov (!%p173_p2), 34  }
   0x7   : > { %s1070_s26 = smov (!%p173_p2), 32   ;;  %s1071_s27 = smov (!%p173_p2), 16  }
   0x8   : > { %s1072_s28 = smov (!%p173_p2), 2   ;;  %s1073_s29 = smov (!%p173_p2), 95  }
   0x9   : > { %s1074_s30 = smov (!%p173_p2), 111   ;;  %s1075_s5 = smov (!%p173_p2), 127  }
   0xa   : > { %s1076_s6 = smov (!%p173_p2), 94   ;;  %s1077_s7 = smov (!%p173_p2), 96  }
   0xb   : > { %v219_v0 = vlaneseq  ;;  %v1066_v1 = vmov 1983009808   ;;  %s1281_s16 = smov (!%p203_p3, %s981_s16), 1  ;;  %v1067_v9 = vmov 0.0   ;;  %vm520_vm4 = vcmask 277504   ;;  %s1078_s8 = smov 112  }
   0xc   : > { %v263_v2 = vunpack.c.l.s4 %v1066_v1  ;;  %s1011_s17 = smul.u32 6, %s1281_s16  ;;  %vm422_vm5 = vcmask 146432   ;;  %vm457_vm6 = vcmask 261120   ;;  %vm359_vm7 = vcmask 130048   ;;  %s1079_s9 = smov 126  }
   0xd   : > { %v220_v3 = vand.u32 127, %v219_v0  ;;  %v266_v7 = vshrl.u32 %v219_v0, 7  ;;  %vm324_vm8 = vcmask 15360   ;;  %vm304_vm9 = vcmask 1043456   ;;  %s1080_s10 = smov 110  }
   0xe   : > { %v264_v6 = vunpack.c.0.s8 %v263_v2  ;;  %s1123_s20 = scalar_lea.vmem %s1275_s0, %s1011_s17  ;;  %s1128_s23 = scalar_lea.vmem %s1276_s1, %s1011_s17  ;;  %vm512_vm10 = vcmask 777216   ;;  %vm414_vm11 = vcmask 908288   ;;  %vm306_vm12 = vcmask 1039360  }
   0xf   : > { %v221_v4 = vadd.s32 128, %v220_v3  ;;  %v226_v5 = vand.u32 15, %v220_v3  ;;  %v258_v17 = vld [vmem:[%s1123_s20] sm:$0xf]  ;;  %vm386_vm13 = vcmask 916480   ;;  %vm449_vm14 = vcmask 900096  }
  0x10   : > { %v1118_v12 = vsub.s32 %v264_v6, %v266_v7  ;;  %v551_v18 = vld [vmem:[%s1128_s23] sm:$0xf]  ;;  %vm547_vm15 = vcmask 769024   ;;  %s1010_s17 = sshll.u32 %s1281_s16, 2 }
  0x11   : > { %v233_v8 = vand.u32 15, %v221_v4  ;;  %vm252_vm0 = vcmp.lt.s32.totalorder %v226_v5, 15  ;;  %vm246_vm1 = vcmp.gt.s32.totalorder %v226_v5, 0  ;;  %v730_v23 = vld [vmem:[%s1128_s23] sm:$0x3f] }
  0x12   : > { %v254_v10 = vsel %vm252_vm0, 1.0, %v1067_v9  ;;  %v248_v11 = vsel %vm246_vm1, 1.0, %v1067_v9  ;;  %v647_v24 = vld [vmem:[%s1128_s23] sm:$0x3f]  ;;  %v732_v26 = vcombine.high %v730_v23, %v730_v23  ;;  %v739_v27 = vrot.slane %v730_v23, %v1118_v12 }
  0x13   : > { %vm253_vm2 = vcmp.lt.s32.totalorder %v233_v8, 15  ;;  %vm247_vm3 = vcmp.gt.s32.totalorder %v233_v8, 0  ;;  %v649_v28 = vcombine.low %v647_v24, %v647_v24  ;;  %v564_v31 = vld [vmem:[%s1128_s23] sm:$0x3f]  ;;  %v663_v32 = vrot.slane %v647_v24, %v1118_v12 }
  0x14   : > { %v255_v13 = vsel %vm253_vm2, 1.0, %v1067_v9  ;;  %v249_v14 = vsel %vm247_vm3, 1.0, %v1067_v9  ;;  %v746_v29 = vrot.slane %v732_v26, %v1118_v12  ;;  %v566_v33 = vcombine.high %v564_v31, %v564_v31  ;;  %v390_v35 = vld [vmem:[%s1123_s20] sm:$0x3f] }
  0x15   : > { %v992_v15 = vpack.c.bf16 %v255_v13, %v254_v10  ;;  %v990_v16 = vpack.c.bf16 %v249_v14, %v248_v11  ;;  %v656_v30 = vrot.slane %v649_v28, %v1118_v12  ;;  %v573_v34 = vrot.slane %v564_v31, %v1118_v12  ;;  %v488_v36 = vld [vmem:[%s1123_s20] sm:$0x3f] }
  0x16   : > { %v392_v37 = vcombine.high %v390_v35, %v390_v35  ;;  %v580_v38 = vrot.slane %v566_v33, %v1118_v12  ;;  %v399_v39 = vrot.slane %v390_v35, %v1118_v12  ;;  %v490_v40 = vcombine.low %v488_v36, %v488_v36  ;;  %v281_v41 = vld [vmem:[%s1123_s20] sm:$0x3f] }
  0x17   : > { %v320_v19 = vrot.slane %v992_v15, %v1118_v12  ;;  %v268_v20 = vrot.slane %v990_v16, %v1118_v12  ;;  %v283_v44 = vcombine.low %v281_v41, %v281_v41  ;;  %v504_v45 = vrot.slane %v488_v36, %v1118_v12  ;;  %v757_v51 = vld [vmem:[%s1128_s23] sm:$0x3f] }
  0x18   : > { %v406_v42 = vrot.slane %v392_v37, %v1118_v12  ;;  %v497_v43 = vrot.slane %v490_v40, %v1118_v12  ;;  %v297_v47 = vrot.slane %v281_v41, %v1118_v12  ;;  %v702_v58 = vld [vmem:[%s1128_s23] sm:$0x3f]  ;;  %vm484_vm0 = vcmask 785408  }
  0x19   : > { %419 = vrot.lane.b32.xlu1 %v320_v19, %s1068_s24  ;;  %517 = vrot.lane.b32.xlu0 %v320_v19, %s1069_s25  ;;  %v270_v21 = vmul.bf16 %v268_v20, %v258_v17  ;;  %v552_v22 = vmul.bf16 %v551_v18, %v268_v20  ;;  %v290_v46 = vrot.slane %v283_v44, %v1118_v12  ;;  %v619_v60 = vld [vmem:[%s1128_s23] sm:$0x3f]  ;;  %vm351_vm1 = vcmask 1031168  }
  0x1a   : > { %v674_v1 = vld [vmem:[%s1128_s23] sm:$0x3f]  ;;  %vm846_vm2 = vcmask 588800  }
  0x1b   : > { %991 = vst.sshfl [vmem:[#allocation2] sm:$0xf pattern:$0x76325410] %v270_v21  ;;  %v554_v25 = vcombine.low %v552_v22, %v552_v22  ;;  %v591_v7 = vld [vmem:[%s1128_s23] sm:$0x3f] }
  0x1c   : > { %v418_v8 = vld [vmem:[%s1123_s20] sm:$0x3f] }
  0x1d   : > { %454 = vrot.lane.b32.xlu1 %v268_v20, %s1070_s26  ;;  %993 = vst.sshfl [vmem:[#allocation2 + $0x20] sm:$0xf0 pattern:$0x76325410] %v554_v25  ;;  %356 = vrot.lane.b32.xlu0 %v268_v20, %s1071_s27  ;;  %v516_v14 = vld [vmem:[%s1123_s20] sm:$0x3f] }
  0x1e   : > { %v453_v22 = vld [vmem:[%s1123_s20] sm:$0x3f] }
  0x1f   : > { %v310_v37 = vld [vmem:[%s1123_s20] sm:$0x3f] }
  0x21   : > { %321 = vrot.lane.b32.xlu0 %v320_v19, %s1072_s28  ;;  %747 = vrot.lane.b32.xlu1 %v739_v27, %s1073_s29 }
  0x25   : > { %749 = vrot.lane.b32.xlu0 %v746_v29, %s1073_s29  ;;  %664 = vrot.lane.b32.xlu1 %v656_v30, %s1074_s30 }
  0x29   : > { %666 = vrot.lane.b32.xlu0 %v663_v32, %s1074_s30  ;;  %581 = vrot.lane.b32.xlu1 %v573_v34, %s1075_s5 }
  0x2d   : > { %583 = vrot.lane.b32.xlu0 %v580_v38, %s1075_s5  ;;  %407 = vrot.lane.b32.xlu1 %v399_v39, %s1074_s30 }
  0x31   : > { %409 = vrot.lane.b32.xlu0 %v406_v42, %s1074_s30  ;;  %505 = vrot.lane.b32.xlu1 %v497_v43, %s1073_s29 }
  0x35   : > { %507 = vrot.lane.b32.xlu0 %v504_v45, %s1073_s29  ;;  %298 = vrot.lane.b32.xlu1 %v290_v46, %s1075_s5 }
  0x39   : > { %300 = vrot.lane.b32.xlu0 %v297_v47, %s1075_s5 }
  0x8b   : > { %v420_v48 = vpop.permute.xlu1 %419  ;;  %v518_v49 = vpop.permute.xlu0 %517 }
  0x8c   : > { %v519_v50 = vrot.slane %v518_v49, 6  ;;  %v421_v53 = vrot.slane %v420_v48, 6 }
  0x8e   : > { %v521_v52 = vsel %vm520_vm4, %v519_v50, %v518_v49  ;;  %v423_v0 = vsel %vm422_vm5, %v421_v53, %v420_v48 }
  0x8f   : > { %v1153_v54 = vmul.bf16 %v757_v51, %v521_v52  ;;  %v455_v55 = vpop.permute.xlu1 %454  ;;  %v357_v56 = vpop.permute.xlu0 %356  ;;  %v1168_v9 = vmul.bf16 %v674_v1, %v423_v0  ;;  %v1178_v19 = vmul.bf16 %v423_v0, %v418_v8  ;;  %v523_v21 = vmul.bf16 %v521_v52, %v516_v14  ;;  %v355_v14 = vld [vmem:[%s1123_s20] sm:$0x3f]  ;;  %s217_s20 = scalar_lea.vmem %s1279_s4, %s1010_s17 }
  0x90   : > { %v456_v57 = vrot.slane %v455_v55, 6  ;;  %v358_v59 = vrot.slane %v357_v56, 6 }
  0x91   : > { %v774_v63 = vrot.slane %v1153_v54, %v1118_v12  ;;  %v684_v23 = vrot.slane %v1168_v9, %v1118_v12  ;;  %v441_v31 = vrot.slane %v1178_v19, %v1118_v12  ;;  %v532_v34 = vrot.slane %v523_v21, %v1118_v12 }
  0x92   : > { %v458_v61 = vsel %vm457_vm6, %v456_v57, %v455_v55  ;;  %v1157_v62 = vsel %vm359_vm7, %v358_v59, %v357_v56  ;;  %v677_v42 = vcombine.high %v1168_v9, %v1168_v9  ;;  %v525_v52 = vcombine.high %v523_v21, %v523_v21 }
  0x93   : > { %v1162_v2 = vmul.bf16 %v702_v58, %v458_v61  ;;  %v620_v3 = vmul.bf16 %v619_v60, %v1157_v62  ;;  %v322_v4 = vpop.permute.xlu0 %321  ;;  %v748_v5 = vpop.permute.xlu1 %747  ;;  %777 = vrot.lane.b32.xlu0 %v774_v63, %s1076_s6  ;;  %v460_v30 = vmul.bf16 %v458_v61, %v453_v22  ;;  %v760_v53 = vcombine.low %v1153_v54, %v1153_v54 }
  0x94   : > { %v323_v6 = vrot.slane %v322_v4, 6  ;;  %v751_v24 = vrot.slane %v748_v5, 4  ;;  %v691_v55 = vrot.slane %v677_v42, %v1118_v12  ;;  %v539_v1 = vrot.slane %v525_v52, %v1118_v12 }
  0x95   : > { %v719_v11 = vrot.slane %v1162_v2, %v1118_v12  ;;  %v629_v13 = vrot.slane %v620_v3, %v1118_v12  ;;  %v622_v33 = vcombine.high %v620_v3, %v620_v3  ;;  %v469_v43 = vrot.slane %v460_v30, %v1118_v12 }
  0x96   : > { %v325_v10 = vsel %vm324_vm8, %v323_v6, %v322_v4  ;;  %v462_v0 = vcombine.high %v460_v30, %v460_v30  ;;  %v705_v54 = vcombine.low %v1162_v2, %v1162_v2  ;;  %v767_v3 = vrot.slane %v760_v53, %v1118_v12 }
  0x97   : > { %v1174_v15 = vmul.bf16 %v591_v7, %v325_v10  ;;  %v750_v16 = vpop.permute.xlu0 %749  ;;  %v665_v17 = vpop.permute.xlu1 %664  ;;  %722 = vrot.lane.b32.xlu0 %v719_v11, %s1077_s7  ;;  %637 = vrot.lane.b32.xlu1 %v629_v13, %s1078_s8  ;;  %v327_v44 = vmul.bf16 %v325_v10, %v310_v37  ;;  %v636_v45 = vrot.slane %v622_v33, %v1118_v12 }
  0x98   : > { %v752_v18 = vrot.slane %v750_v16, 4  ;;  %v668_v26 = vrot.slane %v665_v17, 4  ;;  %v476_v9 = vrot.slane %v462_v0, %v1118_v12  ;;  %v712_v11 = vrot.slane %v705_v54, %v1118_v12 }
  0x99   : > { %v608_v20 = vrot.slane %v1174_v15, %v1118_v12  ;;  %v336_v56 = vrot.slane %v327_v44, %v1118_v12  ;;  %v329_v2 = vcombine.high %v327_v44, %v327_v44  ;;  %v594_v10 = vcombine.low %v1174_v15, %v1174_v15 }
  0x9a   : > { %v753_v28 = vsel %vm304_vm9, %v751_v24, %v752_v18  ;;  %v362_v18 = vmul.bf16 %v1157_v62, %v355_v14  ;;  %v1081_v62 = vmov 0   ;;  %v795_v24 = vld [vmem:[%s1278_s3] sm:$0xf] }
  0x9b   : > { %v667_v25 = vpop.permute.xlu0 %666  ;;  %v582_v27 = vpop.permute.xlu1 %581  ;;  %611 = vrot.lane.b32.xlu0 %v608_v20, %s1079_s9  ;;  %692 = vrot.lane.b32.xlu1 %v684_v23, %s1080_s10  ;;  %v754_v32 = vsel %vm512_vm10, %v748_v5, %v753_v28  ;;  %v343_v20 = vrot.slane %v329_v2, %v1118_v12  ;;  %v601_v15 = vrot.slane %v594_v10, %v1118_v12 }
  0x9c   : > { %v669_v29 = vrot.slane %v667_v25, 4  ;;  %756 = vst [vmem:[#allocation2 + $0x40] sm:$0x33] %v754_v32  ;;  %v585_v36 = vrot.slane %v582_v27, 4  ;;  %v364_v21 = vcombine.low %v362_v18, %v362_v18  ;;  %v378_v22 = vrot.slane %v362_v18, %v1118_v12  ;;  %889 = vmatprep.mubr.bf16.mxu0 %v1081_v62  ;;  %1036 = vset.pattern.permute.xlu1 %v1081_v62 }
  0x9d   : > { %1037 = vset.pattern.permute.xlu0 %v1081_v62 }
  0x9e   : > { %v670_v35 = vsel %vm304_vm9, %v668_v26, %v669_v29 }
  0x9f   : > { %v671_v38 = vsel %vm414_vm11, %v665_v17, %v670_v35  ;;  %v584_v39 = vpop.permute.xlu0 %583  ;;  %v408_v40 = vpop.permute.xlu1 %407  ;;  %444 = vrot.lane.b32.xlu0 %v441_v31, %s1080_s10  ;;  %540 = vrot.lane.b32.xlu1 %v532_v34, %s1076_s6  ;;  %v427_v17 = vcombine.low %v1178_v19, %v1178_v19  ;;  %v371_v19 = vrot.slane %v364_v21, %v1118_v12 }
  0xa0   : > { %673 = vst [vmem:[#allocation2 + $0x30] sm:$0xcc] %v671_v38  ;;  %v586_v41 = vrot.slane %v584_v39, 4  ;;  %v411_v47 = vrot.slane %v408_v40, 4 }
  0xa1   : > { %v434_v23 = vrot.slane %v427_v17, %v1118_v12 }
  0xa2   : > { %v587_v46 = vsel %vm304_vm9, %v585_v36, %v586_v41 }
  0xa3   : > { %v588_v48 = vsel %vm306_vm12, %v582_v27, %v587_v46  ;;  %v410_v49 = vpop.permute.xlu0 %409  ;;  %v506_v50 = vpop.permute.xlu1 %505  ;;  %639 = vrot.lane.b32.xlu0 %v636_v45, %s1078_s8  ;;  %477 = vrot.lane.b32.xlu1 %v469_v43, %s1077_s7 }
  0xa4   : > { %590 = vst [vmem:[#allocation2 + $0x28] sm:$0x33] %v588_v48  ;;  %v412_v51 = vrot.slane %v410_v49, 4  ;;  %v509_v58 = vrot.slane %v506_v50, 4 }
  0xa6   : > { %v413_v57 = vsel %vm304_vm9, %v411_v47, %v412_v51 }
  0xa7   : > { %v415_v59 = vsel %vm414_vm11, %v408_v40, %v413_v57  ;;  %v508_v60 = vpop.permute.xlu0 %507  ;;  %v299_v61 = vpop.permute.xlu1 %298  ;;  %694 = vrot.lane.b32.xlu0 %v691_v55, %s1080_s10  ;;  %344 = vrot.lane.b32.xlu1 %v336_v56, %s1079_s9 }
  0xa8   : > { %417 = vst [vmem:[#allocation2 + $0x10] sm:$0x33] %v415_v59  ;;  %v510_v63 = vrot.slane %v508_v60, 4  ;;  %v302_v5 = vrot.slane %v299_v61, 4 }
  0xaa   : > { %v511_v4 = vsel %vm304_vm9, %v509_v58, %v510_v63 }
  0xab   : > { %v513_v6 = vsel %vm512_vm10, %v506_v50, %v511_v4  ;;  %v301_v7 = vpop.permute.xlu0 %300  ;;  %542 = vrot.lane.b32.xlu0 %v539_v1, %s1076_s6  ;;  %775 = vrot.lane.b32.xlu1 %v767_v3, %s1076_s6 }
  0xac   : > { %515 = vst [vmem:[#allocation2 + $0x18] sm:$0xcc] %v513_v6  ;;  %v303_v8 = vrot.slane %v301_v7, 4 }
  0xae   : > { %v305_v13 = vsel %vm304_vm9, %v302_v5, %v303_v8 }
  0xaf   : > { %v307_v16 = vsel %vm306_vm12, %v299_v61, %v305_v13  ;;  %479 = vrot.lane.b32.xlu0 %v476_v9, %s1077_s7  ;;  %720 = vrot.lane.b32.xlu1 %v712_v11, %s1077_s7 }
  0xb0   : > { %309 = vst [vmem:[#allocation2] sm:$0xcc] %v307_v16 }
  0xb3   : > { %346 = vrot.lane.b32.xlu0 %v343_v20, %s1079_s9  ;;  %609 = vrot.lane.b32.xlu1 %v601_v15, %s1079_s9 }
  0xb7   : > { %381 = vrot.lane.b32.xlu0 %v378_v22, %s1078_s8  ;;  %442 = vrot.lane.b32.xlu1 %v434_v23, %s1080_s10 }
  0xbb   : > { %379 = vrot.lane.b32.xlu1 %v371_v19, %s1078_s8 }
  0xbf   : > { %798 = vperm.xlu1 %1036, %v795_v24  }
 0x105   : > { %v778_v25 = vpop.permute.xlu0 %777 }
 0x106   : > { %v780_v45 = vrot.slane %v778_v25, 4 }
 0x109   : > { %v723_v26 = vpop.permute.xlu0 %722  ;;  %v638_v27 = vpop.permute.xlu1 %637 }
 0x10a   : > { %v641_v33 = vrot.slane %v638_v27, 4  ;;  %v725_v56 = vrot.slane %v723_v26, 4 }
 0x10d   : > { %v612_v28 = vpop.permute.xlu0 %611  ;;  %v693_v29 = vpop.permute.xlu1 %692 }
 0x10e   : > { %v696_v39 = vrot.slane %v693_v29, 4  ;;  %v614_v3 = vrot.slane %v612_v28, 4 }
 0x111   : > { %v1246_v30 = vpop.permute.xlu0 %444  ;;  %v541_v31 = vpop.permute.xlu1 %540 }
 0x112   : > { %v544_v46 = vrot.slane %v541_v31, 4  ;;  %v447_v13 = vrot.slane %v1246_v30, 4 }
 0x115   : > { %v640_v12 = vpop.permute.xlu0 %639  ;;  %v478_v32 = vpop.permute.xlu1 %477 }
 0x116   : > { %v642_v34 = vrot.slane %v640_v12, 4  ;;  %v481_v57 = vrot.slane %v478_v32, 4 }
 0x118   : > { %v643_v35 = vsel %vm304_vm9, %v641_v33, %v642_v34 }
 0x119   : > { %v695_v36 = vpop.permute.xlu0 %694  ;;  %v345_v37 = vpop.permute.xlu1 %344  ;;  %v644_v38 = vsel %vm386_vm13, %v638_v27, %v643_v35 }
 0x11a   : > { %v697_v40 = vrot.slane %v695_v36, 4  ;;  %646 = vst [vmem:[#allocation2 + $0x30] sm:$0x33] %v644_v38  ;;  %v348_v4 = vrot.slane %v345_v37, 4 }
 0x11c   : > { %v698_v41 = vsel %vm304_vm9, %v696_v39, %v697_v40 }
 0x11d   : > { %v543_v42 = vpop.permute.xlu0 %542  ;;  %v776_v43 = vpop.permute.xlu1 %775  ;;  %v699_v44 = vsel %vm449_vm14, %v693_v29, %v698_v41 }
 0x11e   : > { %v545_v47 = vrot.slane %v543_v42, 4  ;;  %v779_v48 = vrot.slane %v776_v43, 4  ;;  %701 = vst [vmem:[#allocation2 + $0x38] sm:$0x33] %v699_v44 }
 0x120   : > { %v546_v49 = vsel %vm304_vm9, %v544_v46, %v545_v47  ;;  %v781_v50 = vsel %vm304_vm9, %v779_v48, %v780_v45 }
 0x121   : > { %v548_v51 = vsel %vm547_vm15, %v541_v31, %v546_v49  ;;  %v782_v52 = vsel %vm547_vm15, %v776_v43, %v781_v50  ;;  %v480_v53 = vpop.permute.xlu0 %479  ;;  %v721_v55 = vpop.permute.xlu1 %720 }
 0x122   : > { %550 = vst [vmem:[#allocation2 + $0x20] sm:$0x33] %v548_v51  ;;  %784 = vst [vmem:[#allocation2 + $0x40] sm:$0xcc] %v782_v52  ;;  %v482_v58 = vrot.slane %v480_v53, 4  ;;  %v724_v59 = vrot.slane %v721_v55, 4 }
 0x124   : > { %v483_v60 = vsel %vm304_vm9, %v481_v57, %v482_v58  ;;  %v726_v61 = vsel %vm304_vm9, %v724_v59, %v725_v56 }
 0x125   : > { %v485_v63 = vsel %vm484_vm0, %v478_v32, %v483_v60  ;;  %v727_v0 = vsel %vm484_vm0, %v721_v55, %v726_v61  ;;  %v347_v54 = vpop.permute.xlu0 %346  ;;  %v610_v1 = vpop.permute.xlu1 %609  ;;  %v785_v32 = vld [vmem:[%s1277_s2] sm:$0x3] }
 0x126   : > { %487 = vst [vmem:[#allocation2 + $0x18] sm:$0x33] %v485_v63  ;;  %729 = vst [vmem:[#allocation2 + $0x38] sm:$0xcc] %v727_v0  ;;  %v349_v5 = vrot.slane %v347_v54, 4  ;;  %v613_v6 = vrot.slane %v610_v1, 4 }
 0x128   : > { %v350_v7 = vsel %vm304_vm9, %v348_v4, %v349_v5  ;;  %v615_v8 = vsel %vm304_vm9, %v613_v6, %v614_v3 }
 0x129   : > { %v352_v9 = vsel %vm351_vm1, %v345_v37, %v350_v7  ;;  %v616_v2 = vsel %vm351_vm1, %v610_v1, %v615_v8  ;;  %v443_v10 = vpop.permute.xlu1 %442  ;;  %v794_v11 = vld [vmem:[#allocation2 + $0x40] sm:$0xff]  ;;  %v382_v18 = vpop.permute.xlu0 %381 }
 0x12a   : > { %354 = vst [vmem:[#allocation2 + $0x8] sm:$0x33] %v352_v9  ;;  %618 = vst [vmem:[#allocation2 + $0x28] sm:$0xcc] %v616_v2  ;;  %v446_v14 = vrot.slane %v443_v10, 4  ;;  %v1003_v16 = vcombine.high %v794_v11, %v794_v11  ;;  %v1002_v17 = vcombine.low %v794_v11, %v794_v11  ;;  %v384_v19 = vrot.slane %v382_v18, 4 }
 0x12c   : > { %v448_v20 = vsel %vm304_vm9, %v446_v14, %v447_v13  ;;  %1004 = vmatprep.subr.msk.bf16.mxu0 %vm304_vm9, %v1003_v16  ;;  %v852_v15 = vsel %vm304_vm9, %v1002_v17, 0 }
 0x12d   : > { %v450_v21 = vsel %vm449_vm14, %v443_v10, %v448_v20  ;;  %864 = vmatpush1.bf16.msra.mxu0 %v852_v15  ;;  %v380_v22 = vpop.permute.xlu1 %379  ;;  %v1046_v23 = vld [vmem:[#allocation2 + $0x34] ss:$8 sps:$4 sm:$0xff]   ;;  %v1048_v24 = vld [vmem:[#allocation2 + $0x30] ss:$8 sps:$4 sm:$0xff]  }
 0x12e   : > { %452 = vst [vmem:[#allocation2 + $0x10] sm:$0xcc] %v450_v21  ;;  %v383_v62 = vrot.slane %v380_v22, 4  ;;  %865 = vmatprep.subr.bf16.mxu0 %v1046_v23 }
 0x130   : > { %v385_v25 = vsel %vm304_vm9, %v383_v62, %v384_v19 }
 0x131   : > { %v387_v26 = vsel %vm386_vm13, %v380_v22, %v385_v25  ;;  %866 = vmatpush1.bf16.msra.mxu0 %v1048_v24  ;;  %v1049_v27 = vld [vmem:[#allocation2 + $0x24] ss:$8 sps:$4 sm:$0xff]   ;;  %v1051_v28 = vld [vmem:[#allocation2 + $0x20] ss:$8 sps:$4 sm:$0xff]  }
 0x132   : > { %389 = vst [vmem:[#allocation2 + $0x8] sm:$0xcc] %v387_v26  ;;  %867 = vmatprep.subr.bf16.mxu0 %v1049_v27 }
 0x135   : > { %868 = vmatpush1.bf16.msra.mxu0 %v1051_v28  ;;  %v1052_v29 = vld [vmem:[#allocation2 + $0x14] ss:$8 sps:$4 sm:$0xff]   ;;  %v1054_v30 = vld [vmem:[#allocation2 + $0x10] ss:$8 sps:$4 sm:$0xff]  }
 0x136   : > { %869 = vmatprep.subr.bf16.mxu0 %v1052_v29 }
 0x139   : > { %870 = vmatpush1.bf16.msra.mxu0 %v1054_v30  ;;  %v1055_v31 = vld [vmem:[#allocation2 + $0x4] ss:$8 sps:$4 sm:$0xff]   ;;  %v1057_v12 = vld [vmem:[#allocation2] ss:$8 sps:$4 sm:$0xff]  }
 0x13a   : > { %871 = vmatprep.subr.bf16.mxu0 %v1055_v31  ;;  %v799_v33 = vpop.permute.xlu1 %798 }
 0x13d   : > { %872 = vmatpush1.bf16.msra.mxu0 %v1057_v12 }
 0x140   : > { %1005 = vmatmul.mubr.msk.bf16.vlgmr.msra.gmra.mxu0 %vm846_vm2, %v785_v32 }
 0x200   : > { %v891_v34 = vpop.f32.mrf.mxu0 }
 0x201   : > { %v892_v35 = vadd.f32 %v891_v34, %v799_v33 }
 0x202   : > { %v893_v36 = vpop.f32.mrf.mxu0 }
 0x203   : > { %v894_v37 = vadd.f32 %v893_v36, %v799_v33  ;;  %v898_v39 = vmax.f32 %v892_v35, 0.0 }
 0x204   : > { %v895_v38 = vpop.f32.mrf.mxu0 }
 0x205   : > { %v899_v40 = vmax.f32 %v894_v37, 0.0 }
 0x206   : > { %v896_v41 = vpop.f32.mrf.mxu0 }
 0x207   : > { %v1006_v42 = vpack.c.bf16 %v899_v40, %v898_v39 }
 0x209   : > { %1007 = vst.sshfl [vmem:[%s217_s20] sm:$0x33 pattern:$0x76325410] %v1006_v42 }
 0x20a PF: > { %s14_s15 = sadd.s32 1, %s1064_s15  }
 0x20b   : > { %p11_p4 = scmp.ge.s32.totalorder %s14_s15, 4  }
 0x20d   :  { %13 = sbr.rel (!%p11_p4) target bundleno = 1 (0x1), region = 69 }

</bundles_post_ra>
